<compile_context>
chip_gen: v6e
topology: v6e:2x2x1
jax: 0.10.0
libtpu: 0.0.40
codegen_flags: <defaults>
</compile_context>

<pallas_src>
import functools

import jax
import jax.numpy as jnp
from jax.experimental import pallas as pl
from jax.experimental.pallas import tpu as pltpu

LEAKY_SLOPE = 0.01  # PyTorch nn.LeakyReLU default
LANE = 128


def _round_up(v, m):
    return ((v + m - 1) // m) * m


def _leaky_relu(x):
    return jnp.where(x >= 0, x, LEAKY_SLOPE * x)


def _ganite_kernel(
    xt_ref,                 # (D, tile_n)        X^T tile, samples on lanes
    wct_ref, bc_ref,        # (Hp, D), (Hp, 1)   common trunk (transposed)
    w1t_ref,                # (H2, Hp)           fused heads' layer 1 (b1 folded)
    w2t_ref,                # (8, H2)            fused output layer (b2 folded)
    out_ref,                # (1, tile_n)        lane-dense ITE row
    *,
    binary_y: bool,
    compute_dtype,
):
    # h = LeakyReLU(Wc^T @ X^T + bc).  Row `h` of bc is 1 and the matching
    # wct row is zero, so h[bias_row] == 1 exactly -> carries b1 below.
    h = jnp.dot(wct_ref[...], xt_ref[...], preferred_element_type=jnp.float32)
    h = _leaky_relu(h + bc_ref[...])                      # (Hp, tile_n), f32

    # Fused treatment heads (head-0 rows [0,H), head-1 rows [H,2H)); b1 is
    # folded into the bias column, row 2H yields a constant 1 carrying b2.
    hc = jnp.dot(w1t_ref[...], h.astype(compute_dtype),
                 preferred_element_type=jnp.float32)
    hc = _leaky_relu(hc)                                  # (H2, tile_n), f32

    # Fused output layer: row 0 = o_0, row 1 = o_1 (b2 folded), rest padding.
    o = jnp.dot(w2t_ref[...], hc.astype(compute_dtype),
                preferred_element_type=jnp.float32)       # (8, tile_n), f32

    if binary_y:
        o = jax.nn.sigmoid(o)

    out_ref[...] = o[1:2, :] - o[0:1, :]                  # ITE, lane-dense


def pack_params(p):
    """Pack torch-layout params into transposed, head-fused, bias-folded weights."""
    d, h = p["wc"].shape
    hp = _round_up(h + 1, LANE)       # trunk rows + 1 bias-carrier row
    h2 = _round_up(2 * h + 1, LANE)   # head0 | head1 | bias-carrier row

    # Common trunk (transposed).  Row `h` of wct is zero; bc[h] = 1 so that
    # h[h] = LeakyReLU(1) = 1 exactly.
    wct = jnp.zeros((hp, d), jnp.float32).at[:h, :].set(p["wc"].T)
    bc = (jnp.zeros((hp, 1), jnp.float32)
          .at[:h, 0].set(p["bc"][0])
          .at[h, 0].set(1.0))

    # Both heads' first layer fused into one block; b1 folded into column `h`
    # (multiplied by the constant-1 row of h); row 2h produces the constant-1
    # carrier for b2.
    w1t = (jnp.zeros((h2, hp), jnp.float32)
           .at[:h, :h].set(p["w01"].T)
           .at[h:2 * h, :h].set(p["w11"].T)
           .at[:h, h].set(p["b01"][0])
           .at[h:2 * h, h].set(p["b11"][0])
           .at[2 * h, h].set(1.0))

    # Fused output layer: row 0 -> head 0, row 1 -> head 1; b2 folded at
    # column 2h (the constant-1 row of hc).
    w2t = (jnp.zeros((8, h2), jnp.float32)
           .at[0, :h].set(p["w02"][:, 0])
           .at[1, h:2 * h].set(p["w12"][:, 0])
           .at[0, 2 * h].set(p["b02"][0, 0])
           .at[1, 2 * h].set(p["b12"][0, 0]))

    return dict(wct=wct, bc=bc, w1t=w1t, w2t=w2t)


def _pick_tile_n(n):
    # Lane-dense batch tiles: aim for >= 4 grid steps (keeps both v7x
    # TensorCores busy and amortizes ~0.35us/step overhead), cap at 2048.
    return int(max(LANE, min(2048, _round_up(pl.cdiv(n, 4), LANE))))


def ganite_forward(x, packed, *, binary_y=False, tile_n=None,
                   compute_dtype=jnp.bfloat16):
    """x: (N, D) float; packed: pack_params() output; returns (N,) ITE."""
    n, d = x.shape
    hp = packed["wct"].shape[0]
    h2 = packed["w1t"].shape[0]
    assert packed["wct"].shape[1] == d, "feature dim mismatch with packed params"

    if tile_n is None:
        tile_n = _pick_tile_n(n)
    assert tile_n % LANE == 0, "tile_n must be a multiple of 128"

    n_pad = _round_up(max(n, tile_n), tile_n)
    grid_n = n_pad // tile_n

    # Samples -> lanes: X streamed pre-transposed, feature dim UNPADDED.
    xt = jnp.zeros((d, n_pad), compute_dtype).at[:, :n].set(
        x.T.astype(compute_dtype))

    wct = packed["wct"].astype(compute_dtype)
    w1t = packed["w1t"].astype(compute_dtype)
    w2t = packed["w2t"].astype(compute_dtype)
    bc = packed["bc"]  # stays f32: added after the f32-accumulated matmul

    kernel = functools.partial(
        _ganite_kernel, binary_y=binary_y, compute_dtype=compute_dtype)

    out = pl.pallas_call(
        kernel,
        out_shape=jax.ShapeDtypeStruct((1, n_pad), jnp.float32),
        grid=(grid_n,),
        in_specs=[
            pl.BlockSpec((d, tile_n), lambda i: (0, i)),   # X^T tile (streamed)
            pl.BlockSpec((hp, d), lambda i: (0, 0)),       # Wc^T      (resident)
            pl.BlockSpec((hp, 1), lambda i: (0, 0)),       # bc        (resident)
            pl.BlockSpec((h2, hp), lambda i: (0, 0)),      # fused W1^T (resident)
            pl.BlockSpec((8, h2), lambda i: (0, 0)),       # fused W2^T (resident)
        ],
        out_specs=pl.BlockSpec((1, tile_n), lambda i: (0, i)),
        compiler_params=pltpu.CompilerParams(
            dimension_semantics=("parallel",),
        ),
    )(xt, wct, bc, w1t, w2t)

    return out[0, :n]


def init_params(key, dim_in, dim_hidden):
    """Deterministic init mimicking torch.nn.Linear default U(-1/sqrt(fan_in), +)."""
    def linear(k, fan_in, fan_out):
        kw, kb = jax.random.split(k)
        bound = 1.0 / jnp.sqrt(jnp.float32(fan_in))
        w = jax.random.uniform(kw, (fan_in, fan_out), jnp.float32, -bound, bound)
        b = jax.random.uniform(kb, (1, fan_out), jnp.float32, -bound, bound)
        return w, b

    keys = jax.random.split(key, 5)
    wc, bc = linear(keys[0], dim_in, dim_hidden)
    w01, b01 = linear(keys[1], dim_hidden, dim_hidden)
    w02, b02 = linear(keys[2], dim_hidden, 1)
    w11, b11 = linear(keys[3], dim_hidden, dim_hidden)
    w12, b12 = linear(keys[4], dim_hidden, 1)
    return dict(
        wc=wc, bc=bc,
        w01=w01, b01=b01, w02=w02, b02=b02,
        w11=w11, b11=b11, w12=w12, b12=b12,
    )


def ganite_forward_ref(x, p, *, binary_y=False):
    """Pure-JAX reference (matches the torch InferenceNets forward)."""
    h = jax.nn.leaky_relu(x @ p["wc"] + p["bc"], LEAKY_SLOPE)
    h0 = jax.nn.leaky_relu(h @ p["w01"] + p["b01"], LEAKY_SLOPE)
    o0 = h0 @ p["w02"] + p["b02"]
    h1 = jax.nn.leaky_relu(h @ p["w11"] + p["b11"], LEAKY_SLOPE)
    o1 = h1 @ p["w12"] + p["b12"]
    if binary_y:
        o0, o1 = jax.nn.sigmoid(o0), jax.nn.sigmoid(o1)
    return (o1 - o0)[:, 0]


if __name__ == "__main__":
    # Small shapes consistent with the module (Ganite default depth=0):
    # D features, H hidden; N chosen so the batch grid has >= 4 pipelined
    # steps (auto tile_n -> 512, grid = 4).
    N, D, H = 2048, 16, 32

    key = jax.random.PRNGKey(0)
    kx, kp = jax.random.split(key)
    x = jax.random.normal(kx, (N, D), jnp.float32)
    params = init_params(kp, D, H)
    packed = pack_params(params)

    ite_ref = ganite_forward_ref(x, params, binary_y=False)

    # f32 matmul path -- tight check against the pure-JAX reference.
    ite_f32 = ganite_forward(x, packed, binary_y=False,
                             compute_dtype=jnp.float32)
    jax.block_until_ready(ite_f32)
    assert ite_f32.shape == (N,)
    assert jnp.allclose(ite_f32, ite_ref, atol=1e-3, rtol=1e-3)

    # Default path: bf16 matmul operands (MXU-native on v5e/v6e/v7x), f32
    # accumulation + f32 elementwise; relaxed tolerance vs f32 reference.
    ite_bf16 = ganite_forward(x, packed, binary_y=False)
    jax.block_until_ready(ite_bf16)
    assert jnp.allclose(ite_bf16, ite_ref, atol=1e-1, rtol=0)

    # Binary-Y path (sigmoid on each head) + non-multiple batch size to
    # exercise row padding / output slicing.
    x_odd = x[:777]
    ite_b = ganite_forward(x_odd, packed, binary_y=True,
                           compute_dtype=jnp.float32)
    jax.block_until_ready(ite_b)
    ite_b_ref = ganite_forward_ref(x_odd, params, binary_y=True)
    assert ite_b.shape == (777,)
    assert jnp.allclose(ite_b, ite_b_ref, atol=1e-3, rtol=1e-3)

    print("KERNEL_OK")
</pallas_src>

<mosaic_0001>
module attributes {stable_mosaic.version = 11 : i64} {
  func.func @_ganite_kernel(%arg0: i32, %arg1: memref<16x512xf32, #tpu.memory_space<vmem>>, %arg2: memref<128x16xf32, #tpu.memory_space<vmem>>, %arg3: memref<128x1xf32, #tpu.memory_space<vmem>>, %arg4: memref<128x128xf32, #tpu.memory_space<vmem>>, %arg5: memref<8x128xf32, #tpu.memory_space<vmem>>, %arg6: memref<1x512xf32, #tpu.memory_space<vmem>>) attributes {dimension_semantics = [#tpu.dimension_semantics<parallel>], iteration_bounds = array<i64: 4>, scalar_prefetch = 0 : i64, scratch_operands = 0 : i64, tpu.core_type = #tpu.core_type<tc>, window_params = [{transform_indices = @transform_0, window_bounds = array<i64: 16, 512>}, {pipeline_mode = #tpu.pipeline_mode<synchronous>, transform_indices = @transform_1, window_bounds = array<i64: 128, 16>}, {pipeline_mode = #tpu.pipeline_mode<synchronous>, transform_indices = @transform_2, window_bounds = array<i64: 128, 1>}, {pipeline_mode = #tpu.pipeline_mode<synchronous>, transform_indices = @transform_3, window_bounds = array<i64: 128, 128>}, {pipeline_mode = #tpu.pipeline_mode<synchronous>, transform_indices = @transform_4, window_bounds = array<i64: 8, 128>}, {transform_indices = @transform_5, window_bounds = array<i64: 1, 512>}]} {
    %c0 = arith.constant 0 : index
    %c0_0 = arith.constant 0 : index
    %0 = vector.load %arg2[%c0, %c0_0] : memref<128x16xf32, #tpu.memory_space<vmem>>, vector<128x16xf32>
    %c0_1 = arith.constant 0 : index
    %c0_2 = arith.constant 0 : index
    %1 = vector.load %arg1[%c0_1, %c0_2] : memref<16x512xf32, #tpu.memory_space<vmem>>, vector<16x512xf32>
    %cst = arith.constant dense<0.000000e+00> : vector<128x512xf32>
    %2 = tpu.matmul %0, %1, %cst {dimension_numbers = #tpu.dot_dimension_numbers<[1], [0], [0], [1], [0, 0, 1, 1], [], []>} : vector<128x16xf32>, vector<16x512xf32>, vector<128x512xf32> -> vector<128x512xf32>
    %c0_3 = arith.constant 0 : index
    %c0_4 = arith.constant 0 : index
    %3 = vector.load %arg3[%c0_3, %c0_4] : memref<128x1xf32, #tpu.memory_space<vmem>>, vector<128x1xf32>
    %4 = vector.broadcast %3 : vector<128x1xf32> to vector<128x512xf32>
    %5 = arith.addf %2, %4 : vector<128x512xf32>
    %cst_5 = arith.constant 0.000000e+00 : f32
    %6 = vector.broadcast %cst_5 : f32 to vector<128x512xf32>
    %7 = arith.cmpf oge, %5, %6 : vector<128x512xf32>
    %cst_6 = arith.constant 0.00999999977 : f32
    %8 = vector.broadcast %cst_6 : f32 to vector<128x512xf32>
    %9 = arith.mulf %8, %5 : vector<128x512xf32>
    %10 = arith.select %7, %5, %9 : vector<128x512xi1>, vector<128x512xf32>
    %c0_7 = arith.constant 0 : index
    %c0_8 = arith.constant 0 : index
    %11 = vector.load %arg4[%c0_7, %c0_8] : memref<128x128xf32, #tpu.memory_space<vmem>>, vector<128x128xf32>
    %cst_9 = arith.constant dense<0.000000e+00> : vector<128x512xf32>
    %12 = tpu.matmul %11, %10, %cst_9 {dimension_numbers = #tpu.dot_dimension_numbers<[1], [0], [0], [1], [0, 0, 1, 1], [], []>} : vector<128x128xf32>, vector<128x512xf32>, vector<128x512xf32> -> vector<128x512xf32>
    %cst_10 = arith.constant 0.000000e+00 : f32
    %13 = vector.broadcast %cst_10 : f32 to vector<128x512xf32>
    %14 = arith.cmpf oge, %12, %13 : vector<128x512xf32>
    %cst_11 = arith.constant 0.00999999977 : f32
    %15 = vector.broadcast %cst_11 : f32 to vector<128x512xf32>
    %16 = arith.mulf %15, %12 : vector<128x512xf32>
    %17 = arith.select %14, %12, %16 : vector<128x512xi1>, vector<128x512xf32>
    %c0_12 = arith.constant 0 : index
    %c0_13 = arith.constant 0 : index
    %18 = vector.load %arg5[%c0_12, %c0_13] : memref<8x128xf32, #tpu.memory_space<vmem>>, vector<8x128xf32>
    %cst_14 = arith.constant dense<0.000000e+00> : vector<8x512xf32>
    %19 = tpu.matmul %18, %17, %cst_14 {dimension_numbers = #tpu.dot_dimension_numbers<[1], [0], [0], [1], [0, 0, 1, 1], [], []>} : vector<8x128xf32>, vector<128x512xf32>, vector<8x512xf32> -> vector<8x512xf32>
    %20 = vector.extract_strided_slice %19 {offsets = [1, 0], sizes = [1, 512], strides = [1, 1]} : vector<8x512xf32> to vector<1x512xf32>
    %21 = vector.extract_strided_slice %19 {offsets = [0, 0], sizes = [1, 512], strides = [1, 1]} : vector<8x512xf32> to vector<1x512xf32>
    %22 = arith.subf %20, %21 : vector<1x512xf32>
    %c0_15 = arith.constant 0 : index
    %c0_16 = arith.constant 0 : index
    %23 = vector.load %arg6[%c0_15, %c0_16] : memref<1x512xf32, #tpu.memory_space<vmem>>, vector<1x512xf32>
    tpu.vector_store %arg6[%c0_15, %c0_16], %22 {strides = array<i32>} : memref<1x512xf32, #tpu.memory_space<vmem>>, vector<1x512xf32>,
    return
  }
  func.func @transform_0(%arg0: i32) -> (i32, i32) {
    %c0_i32 = arith.constant 0 : i32
    %c0_i32_0 = arith.constant 0 : i32
    return %c0_i32, %arg0 : i32, i32
  }
  func.func @transform_1(%arg0: i32) -> (i32, i32) {
    %c0_i32 = arith.constant 0 : i32
    %c0_i32_0 = arith.constant 0 : i32
    %c0_i32_1 = arith.constant 0 : i32
    return %c0_i32, %c0_i32_0 : i32, i32
  }
  func.func @transform_2(%arg0: i32) -> (i32, i32) {
    %c0_i32 = arith.constant 0 : i32
    %c0_i32_0 = arith.constant 0 : i32
    %c0_i32_1 = arith.constant 0 : i32
    return %c0_i32, %c0_i32_0 : i32, i32
  }
  func.func @transform_3(%arg0: i32) -> (i32, i32) {
    %c0_i32 = arith.constant 0 : i32
    %c0_i32_0 = arith.constant 0 : i32
    %c0_i32_1 = arith.constant 0 : i32
    return %c0_i32, %c0_i32_0 : i32, i32
  }
  func.func @transform_4(%arg0: i32) -> (i32, i32) {
    %c0_i32 = arith.constant 0 : i32
    %c0_i32_0 = arith.constant 0 : i32
    %c0_i32_1 = arith.constant 0 : i32
    return %c0_i32, %c0_i32_0 : i32, i32
  }
  func.func @transform_5(%arg0: i32) -> (i32, i32) {
    %c0_i32 = arith.constant 0 : i32
    %c0_i32_0 = arith.constant 0 : i32
    return %c0_i32, %arg0 : i32, i32
  }
}

</mosaic_0001>

<bundles_post_ra>
// kernel: tpu_custom_call.1
= control target key start
LH: loop header
LB: loop body
LE: loop exit
PB: predicated region body
PF: predicated region fallthrough
CT: control target
= control target key end

     0   :  { %10 = vsyncpa [#allocation4], 0  ;;  %s3547_s0 = inlined_call_operand.vmem [shape: f32[16,2048], index: 0, kind: input, shape index: {}]   ;;  %s3548_s1 = inlined_call_operand.vmem [shape: f32[128,16], index: 1, kind: input, shape index: {}]   ;;  %s3549_s2 = inlined_call_operand.vmem [shape: f32[128,1], index: 2, kind: input, shape index: {}]   ;;  %s3550_s3 = inlined_call_operand.hbm [shape: f32[128,128], index: 3, kind: input, shape index: {}]   ;;  %s3551_s4 = inlined_call_operand.vmem [shape: f32[8,128], index: 4, kind: input, shape index: {}]   ;;  %s3552_s5 = inlined_call_operand.hbm [shape: f32[1,2048], index: 5, kind: output, shape index: {}]  }
   0x1   :  { %11 = vsyncpa [#allocation5], 0 }
   0x2   :  { %13 = vsyncpa [#allocation5 + $0x1], 0  ;;  %s2008_s18 = smov 0   ;;  %s2010_s19 = smov 0  }
   0x3   :  { %s2012_s20 = smov 0   ;;  %s2014_s21 = smov 0  }
   0x4 LB: > { %s2029_s22 = sadd.s32 4294967295, %s1969_s21   ;;  %s1772_s23 = sadd.s32 4294967294, %s1969_s21   ;;  %s1969_s21 = sphi %s2014_s21, %s3970_s21   ;;  %s1965_s20 = sphi %s2012_s20, %s3969_s20   ;;  %s1961_s19 = sphi %s2010_s19, %s3968_s19   ;;  %s1957_s18 = sphi %s2008_s18, %s3967_s18  }
   0x5   : > { %s2033_s24 = sadd.s32 1, %s1969_s21   ;;  %s26_s25 = sadd.s32 1, %s1965_s20 }
   0x6   : > { %s23_s26 = ssub.s32 %s1969_s21, %s2033_s24  ;;  %p33_p0 = scmp.ne.s32.totalorder %s1965_s20, %s1961_s19 }
   0x7   : > { %p24_p1 = scmp.eq.s32.totalorder %s23_s26, 0  ;;  %p34_p2 = scmp.eq.s32.totalorder %s1969_s21, 0 }
   0x8   : > { %p147_p3 = scmp.eq.s32.totalorder %s2029_s22, 3  ;;  %p152_p4 = scmp.ne.s32.totalorder %s1961_s19, %s1957_s18 }
   0x9   : > { %s2045_s27 = scalar_select %p24_p1, %s1965_s20, %s26_s25  }
   0xa   : > { %p2047_p5 = por %p34_p2, %p33_p0  ;;  %p2051_p6 = por %p147_p3, %p33_p0 }
   0xb   : > { %p153_p7 = scmp.eq.s32.totalorder %s1772_s23, 3  ;;  %p1773_p8 = scmp.ge.s32.totalorder %s1969_s21, 1 }
   0xc   : > { %s3683_s29 = scalar_select %p2051_p6, 1, 0 }
   0xd   : > { %p160_p9 = scmp.lt.s32.totalorder %s1969_s21, 5  ;;  %p2057_p10 = por %p153_p7, %p152_p4 }
   0xe   : > { %p1836_p11 = scmp.eq.s32.totalorder %s2029_s22, 0  ;;  %s1971_s7 = smov [#allocation3]  }
   0xf   : > { %s3684_s30 = scalar_select %p2057_p10, 1, 0 }
  0x10   : > { %p2062_p12 = pnand %p1773_p8, %p160_p9  ;;  %s178_s8 = sshll.u32 %s1971_s7, 4  ;;  %s179_s8 = int_to_ptr.vmem [resolvable:$true] %s178_s8 }
  0x11   : > { %s1890_s9 = scalar_lea.vmem %s179_s8, 2048  ;;  %p1898_p7 = scmp.lt.s32.totalorder %s179_s8, %s179_s8 }
  0x12   : > { %p1828_p13 = pneg %p2062_p12  ;;  %p1891_p2 = scmp.ne.s32.totalorder %s179_s8, %s1890_s9 }
  0x13   : > { %p1899_p10 = scmp.lt.s32.totalorder %s1890_s9, %s1890_s9 }
  0x14   : > { %p1829_p0 = pnand %p1836_p11, %p1828_p13 }
  0x15   : > { %p1900_p6 = por %p1899_p10, %p1898_p7 }
  0x16   : > { %p1881_p1 = pneg %p1829_p0 }
  0x18   : > { %p1893_p3 = pnand %p1891_p2, %p1881_p1 }
  0x1a   : > { %p1894_p4 = pneg %p1893_p3 }
  0x1c   : > { %p1901_p8 = pnand %p1900_p6, %p1894_p4 }
  0x1e   : > { %1904 = shalt.err (!%p1901_p8)
}
  0x1f   : > { %s1972_s10 = smov 128   ;;  %s1973_s11 = smov 8  }
  0x20   : > { %1831 = dma.hbm_to_vmem [thread:$0]  (!%p1829_p0), %s3550_s3, 2048, %s179_s8, [#allocation4], %s1972_s10, %s1972_s10, %s1973_s11  }
  0x21   : > { %p1775_p9 = scmp.ge.s32.totalorder %s1969_s21, 4 }
  0x23   : > { %191 = sbr.rel (%p1775_p9) target bundleno = 48 (0x30), region = 32 }
  0x28   : > { %194 = sbr.rel (!%p2047_p5) target bundleno = 48 (0x30), region = 36  ;;  %s196_s14 = sand.u32 (%p2047_p5), 1, %s1965_s20  }
  0x29   : > { %s1820_s15 = sshll.u32 (%p2047_p5), %s1969_s21, 5  ;;  %s1776_s16 = sshll.u32 (%p2047_p5), %s196_s14, 6 }
  0x2a   : > { %s201_s25 = scalar_lea.vmem (%p2047_p5), %s3547_s0, %s1820_s15  ;;  %s198_s26 = scalar_lea.vmem (%p2047_p5), [#allocation2], %s1776_s16 }
  0x2b   : > { %v214_v0 = vld [vmem:[%s201_s25] sm:$0xff] (%p2047_p5)  ;;  %v216_v1 = vld [vmem:[%s201_s25 + $0x8] sm:$0xff] (%p2047_p5)  ;;  %v218_v2 = vld [vmem:[%s201_s25 + $0x10] sm:$0xff] (%p2047_p5) }
  0x2c   : > { %215 = vst [vmem:[%s198_s26] sm:$0xff] (%p2047_p5), %v214_v0  ;;  %217 = vst [vmem:[%s198_s26 + $0x8] sm:$0xff] (%p2047_p5), %v216_v1  ;;  %v220_v3 = vld [vmem:[%s201_s25 + $0x18] sm:$0xff] (%p2047_p5)  ;;  %v222_v4 = vld [vmem:[%s201_s25 + $0x80] sm:$0xff] (%p2047_p5) }
  0x2d   : > { %219 = vst [vmem:[%s198_s26 + $0x10] sm:$0xff] %v218_v2  ;;  %v224_v5 = vld [vmem:[%s201_s25 + $0x88] sm:$0xff]  ;;  %221 = vst [vmem:[%s198_s26 + $0x18] sm:$0xff] %v220_v3  ;;  %v226_v6 = vld [vmem:[%s201_s25 + $0x90] sm:$0xff] }
  0x2e   : > { %223 = vst [vmem:[%s198_s26 + $0x20] sm:$0xff] %v222_v4  ;;  %225 = vst [vmem:[%s198_s26 + $0x28] sm:$0xff] %v224_v5  ;;  %v228_v7 = vld [vmem:[%s201_s25 + $0x98] sm:$0xff] }
  0x2f   : > { %227 = vst [vmem:[%s198_s26 + $0x30] sm:$0xff] %v226_v6  ;;  %229 = vst [vmem:[%s198_s26 + $0x38] sm:$0xff] %v228_v7 }
  0x30 PF: > { %238 = sbr.rel (%p2062_p12) target bundleno = 866 (0x362), region = 59 }
  0x35   : > { %s2084_s28 = sand.u32 1, %s1961_s19  }
  0x36   : > { %s1780_s7 = sshll.u32 %s2084_s28, 6 }
  0x37   : > { %s243_s8 = scalar_lea.vmem [#allocation2], %s1780_s7 }
  0x38   : > { %1948 = dma.done.wait (%p1836_p11), [#allocation4], 2048  }
  0x39   : > { %1950 = vsyncadd (%p1836_p11), [#allocation4], 4294965248  ;;  %v3554_v8 = vmov 0.0   ;;  %v1975_v9 = vmov 0   ;;  %v295_v10 = vld [vmem:[%s243_s8 + $0x28] sm:$0xff]  ;;  %v297_v11 = vld [vmem:[%s243_s8 + $0x38] sm:$0xff] }
  0x3a   : > { %507 = vmatprep.mubr.f32.mxu0 %v3554_v8  ;;  %668 = vmatprep.mubr.f32.mxu1 %v3554_v8  ;;  %v294_v12 = vld [vmem:[%s243_s8 + $0x20] sm:$0xff]  ;;  %v296_v13 = vld [vmem:[%s243_s8 + $0x30] sm:$0xff]  ;;  %v291_v14 = vld [vmem:[%s243_s8 + $0x8] sm:$0xff]  ;;  %vm394_vm0 = vcmask 130048   ;;  %s1782_s14 = sshll.u32 %s2084_s28, 2  ;;  %s1821_s15 = sshll.u32 %s2029_s22, 6 }
  0x3b   : > { %1878 = vset.pattern.permute.xlu1 %v1975_v9  ;;  %1877 = vset.pattern.permute.xlu0 %v1975_v9  ;;  %v293_v15 = vld [vmem:[%s243_s8 + $0x18] sm:$0xff]  ;;  %v290_v16 = vld [vmem:[%s243_s8] sm:$0xff]  ;;  %v292_v17 = vld [vmem:[%s243_s8 + $0x10] sm:$0xff]  ;;  %s271_s16 = scalar_lea.vmem [#allocation6], %s1782_s14  ;;  %s1693_s26 = scalar_lea.hbm %s3552_s5, %s1821_s15 }
  0x3c   : > { %471 = vmatprep.subr.mxu0 %v295_v10  ;;  %632 = vmatprep.subr.mxu1 %v297_v11  ;;  %v274_v18 = vld [vmem:[%s3548_s1] sm:$0xff]  ;;  %v275_v19 = vld [vmem:[%s3548_s1 + $0x8] sm:$0xff]  ;;  %v313_v21 = vld [vmem:[%s3549_s2 + $0x78] sm:$0xff]  ;;  %s1695_s17 = sshll.u32 %s271_s16, 4  ;;  %s1681_s7 = scalar_lea.sflag [#allocation5], %s2084_s28  ;;  %s1696_s17 = int_to_ptr.vmem [resolvable:$true] %s1695_s17 }
  0x3d   : > { %472 = vmatpush1.msra.mxu0 %v294_v12  ;;  %633 = vmatpush1.msra.mxu1 %v296_v13  ;;  %v311_v20 = vld [vmem:[%s3549_s2 + $0x68] sm:$0xff]  ;;  %v310_v22 = vld [vmem:[%s3549_s2 + $0x60] sm:$0xff]  ;;  %v312_v23 = vld [vmem:[%s3549_s2 + $0x70] sm:$0xff]  ;;  %s1905_s8 = scalar_lea.vmem %s1696_s17, 64  ;;  %p3965_p6 = scmp.ne.s32.totalorder %s3683_s29, 0 }
  0x3e   : > { %473 = vmatprep.subr.mxu0 %v291_v14  ;;  %634 = vmatprep.subr.mxu1 %v293_v15  ;;  %v276_v24 = vld [vmem:[%s3548_s1 + $0x10] sm:$0xff]  ;;  %v309_v26 = vld [vmem:[%s3549_s2 + $0x58] sm:$0xff]  ;;  %v306_v28 = vld [vmem:[%s3549_s2 + $0x40] sm:$0xff]  ;;  %p1906_p5 = scmp.ne.s32.totalorder %s1696_s17, %s1905_s8  ;;  %s1977_s6 = smov [#allocation6]  }
  0x3f   : > { %474 = vmatpush1.msra.mxu0 %v290_v16  ;;  %635 = vmatpush1.msra.mxu1 %v292_v17  ;;  %v308_v25 = vld [vmem:[%s3549_s2 + $0x50] sm:$0xff]  ;;  %v277_v27 = vld [vmem:[%s3548_s1 + $0x18] sm:$0xff]  ;;  %v307_v29 = vld [vmem:[%s3549_s2 + $0x48] sm:$0xff]  ;;  %s1909_s9 = sshll.u32 %s1977_s6, 4  ;;  %s1910_s9 = int_to_ptr.vmem [resolvable:$false] %s1909_s9 }
  0x40   : > { %1783 = vmatmul.mubr.msk.f32.vlgmr.msra.gmra.mxu0 %vm394_vm0, %v274_v18  ;;  %1799 = vmatmul.mubr.msk.f32.vlgmr.msra.gmra.mxu1 %vm394_vm0, %v274_v18  ;;  %v278_v30 = vld [vmem:[%s3548_s1 + $0x20] sm:$0xff]  ;;  %v304_v31 = vld [vmem:[%s3549_s2 + $0x30] sm:$0xff]  ;;  %v305_v32 = vld [vmem:[%s3549_s2 + $0x38] sm:$0xff]  ;;  %p1907_p10 = pnand %p1906_p5, %p3965_p6  ;;  %s1911_s22 = scalar_lea.vmem %s1910_s9, 128 }
  0x41   : > { %513 = vmatprep.mubr.f32.mxu0 %v3554_v8  ;;  %674 = vmatprep.mubr.f32.mxu1 %v3554_v8  ;;  %v279_v33 = vld [vmem:[%s3548_s1 + $0x28] sm:$0xff]  ;;  %v302_v34 = vld [vmem:[%s3549_s2 + $0x20] sm:$0xff]  ;;  %v280_v36 = vld [vmem:[%s3548_s1 + $0x30] sm:$0xff]  ;;  %p1912_p12 = scmp.lt.s32.totalorder %s1696_s17, %s1910_s9  ;;  %p1913_p13 = scmp.lt.s32.totalorder %s1911_s22, %s1905_s8 }
  0x42   : > { %381 = vperm.xlu1 %1878, %v311_v20   ;;  %391 = vperm.xlu0 %1877, %v313_v21   ;;  %v303_v35 = vld [vmem:[%s3549_s2 + $0x28] sm:$0xff]  ;;  %v300_v37 = vld [vmem:[%s3549_s2 + $0x10] sm:$0xff]  ;;  %v301_v38 = vld [vmem:[%s3549_s2 + $0x18] sm:$0xff]  ;;  %p1908_p11 = pneg %p1907_p10 }
  0x43   : > { %v281_v39 = vld [vmem:[%s3548_s1 + $0x38] sm:$0xff]  ;;  %v298_v40 = vld [vmem:[%s3549_s2] sm:$0xff]  ;;  %v299_v41 = vld [vmem:[%s3549_s2 + $0x8] sm:$0xff]  ;;  %p1914_p0 = por %p1913_p13, %p1912_p12 }
  0x44   : > { %1784 = vmatmul.mubr.msk.f32.gmra.mxu0 %vm394_vm0, %v275_v19  ;;  %1800 = vmatmul.mubr.msk.f32.gmra.mxu1 %vm394_vm0, %v275_v19  ;;  %v282_v42 = vld [vmem:[%s3548_s1 + $0x40] sm:$0xff]  ;;  %v283_v43 = vld [vmem:[%s3548_s1 + $0x48] sm:$0xff]  ;;  %v284_v44 = vld [vmem:[%s3548_s1 + $0x50] sm:$0xff] }
  0x45   : > { %519 = vmatprep.mubr.f32.mxu0 %v3554_v8  ;;  %680 = vmatprep.mubr.f32.mxu1 %v3554_v8  ;;  %v285_v45 = vld [vmem:[%s3548_s1 + $0x58] sm:$0xff]  ;;  %v286_v46 = vld [vmem:[%s3548_s1 + $0x60] sm:$0xff]  ;;  %v287_v47 = vld [vmem:[%s3548_s1 + $0x68] sm:$0xff]  ;;  %p1915_p1 = pnand %p1914_p0, %p1908_p11 }
  0x46   : > { %376 = vperm.xlu1 %1878, %v310_v22   ;;  %386 = vperm.xlu0 %1877, %v312_v23   ;;  %v288_v48 = vld [vmem:[%s3548_s1 + $0x70] sm:$0xff]  ;;  %v289_v49 = vld [vmem:[%s3548_s1 + $0x78] sm:$0xff] }
  0x48   : > { %1785 = vmatmul.mubr.msk.f32.gmra.mxu0 %vm394_vm0, %v276_v24  ;;  %1801 = vmatmul.mubr.msk.f32.gmra.mxu1 %vm394_vm0, %v276_v24 }
  0x49   : > { %525 = vmatprep.mubr.f32.mxu0 %v3554_v8  ;;  %686 = vmatprep.mubr.f32.mxu1 %v3554_v8 }
  0x4a   : > { %366 = vperm.xlu1 %1878, %v308_v25   ;;  %371 = vperm.xlu0 %1877, %v309_v26  }
  0x4c   : > { %1786 = vmatmul.mubr.msk.f32.gmra.mxu0 %vm394_vm0, %v277_v27  ;;  %1802 = vmatmul.mubr.msk.f32.gmra.mxu1 %vm394_vm0, %v277_v27 }
  0x4d   : > { %531 = vmatprep.mubr.f32.mxu0 %v3554_v8  ;;  %692 = vmatprep.mubr.f32.mxu1 %v3554_v8 }
  0x4e   : > { %356 = vperm.xlu1 %1878, %v306_v28   ;;  %361 = vperm.xlu0 %1877, %v307_v29  }
  0x50   : > { %1787 = vmatmul.mubr.msk.f32.gmra.mxu0 %vm394_vm0, %v278_v30  ;;  %1803 = vmatmul.mubr.msk.f32.gmra.mxu1 %vm394_vm0, %v278_v30 }
  0x51   : > { %537 = vmatprep.mubr.f32.mxu0 %v3554_v8  ;;  %698 = vmatprep.mubr.f32.mxu1 %v3554_v8 }
  0x52   : > { %346 = vperm.xlu1 %1878, %v304_v31   ;;  %351 = vperm.xlu0 %1877, %v305_v32  }
  0x54   : > { %1788 = vmatmul.mubr.msk.f32.gmra.mxu0 %vm394_vm0, %v279_v33  ;;  %1804 = vmatmul.mubr.msk.f32.gmra.mxu1 %vm394_vm0, %v279_v33 }
  0x55   : > { %543 = vmatprep.mubr.f32.mxu0 %v3554_v8  ;;  %704 = vmatprep.mubr.f32.mxu1 %v3554_v8 }
  0x56   : > { %336 = vperm.xlu1 %1878, %v302_v34   ;;  %341 = vperm.xlu0 %1877, %v303_v35  }
  0x58   : > { %1789 = vmatmul.mubr.msk.f32.gmra.mxu0 %vm394_vm0, %v280_v36  ;;  %1805 = vmatmul.mubr.msk.f32.gmra.mxu1 %vm394_vm0, %v280_v36 }
  0x59   : > { %549 = vmatprep.mubr.f32.mxu0 %v3554_v8  ;;  %710 = vmatprep.mubr.f32.mxu1 %v3554_v8 }
  0x5a   : > { %326 = vperm.xlu1 %1878, %v300_v37   ;;  %331 = vperm.xlu0 %1877, %v301_v38  }
  0x5c   : > { %1790 = vmatmul.mubr.msk.f32.gmra.mxu0 %vm394_vm0, %v281_v39  ;;  %1806 = vmatmul.mubr.msk.f32.gmra.mxu1 %vm394_vm0, %v281_v39 }
  0x5d   : > { %555 = vmatprep.mubr.f32.mxu0 %v3554_v8  ;;  %716 = vmatprep.mubr.f32.mxu1 %v3554_v8 }
  0x5e   : > { %316 = vperm.xlu1 %1878, %v298_v40   ;;  %321 = vperm.xlu0 %1877, %v299_v41  }
  0x60   : > { %1791 = vmatmul.mubr.msk.f32.gmra.mxu0 %vm394_vm0, %v282_v42  ;;  %1807 = vmatmul.mubr.msk.f32.gmra.mxu1 %vm394_vm0, %v282_v42 }
  0x61   : > { %561 = vmatprep.mubr.f32.mxu0 %v3554_v8  ;;  %722 = vmatprep.mubr.f32.mxu1 %v3554_v8 }
  0x64   : > { %1792 = vmatmul.mubr.msk.f32.gmra.mxu0 %vm394_vm0, %v283_v43  ;;  %1808 = vmatmul.mubr.msk.f32.gmra.mxu1 %vm394_vm0, %v283_v43 }
  0x65   : > { %567 = vmatprep.mubr.f32.mxu0 %v3554_v8  ;;  %728 = vmatprep.mubr.f32.mxu1 %v3554_v8 }
  0x68   : > { %1793 = vmatmul.mubr.msk.f32.gmra.mxu0 %vm394_vm0, %v284_v44  ;;  %1809 = vmatmul.mubr.msk.f32.gmra.mxu1 %vm394_vm0, %v284_v44 }
  0x69   : > { %573 = vmatprep.mubr.f32.mxu0 %v3554_v8  ;;  %734 = vmatprep.mubr.f32.mxu1 %v3554_v8 }
  0x6c   : > { %1794 = vmatmul.mubr.msk.f32.gmra.mxu0 %vm394_vm0, %v285_v45  ;;  %1810 = vmatmul.mubr.msk.f32.gmra.mxu1 %vm394_vm0, %v285_v45 }
  0x6d   : > { %579 = vmatprep.mubr.f32.mxu0 %v3554_v8  ;;  %740 = vmatprep.mubr.f32.mxu1 %v3554_v8 }
  0x70   : > { %1795 = vmatmul.mubr.msk.f32.gmra.mxu0 %vm394_vm0, %v286_v46  ;;  %1811 = vmatmul.mubr.msk.f32.gmra.mxu1 %vm394_vm0, %v286_v46 }
  0x71   : > { %585 = vmatprep.mubr.f32.mxu0 %v3554_v8  ;;  %746 = vmatprep.mubr.f32.mxu1 %v3554_v8 }
  0x74   : > { %1796 = vmatmul.mubr.msk.f32.gmra.mxu0 %vm394_vm0, %v287_v47  ;;  %1812 = vmatmul.mubr.msk.f32.gmra.mxu1 %vm394_vm0, %v287_v47 }
  0x75   : > { %591 = vmatprep.mubr.f32.mxu0 %v3554_v8  ;;  %752 = vmatprep.mubr.f32.mxu1 %v3554_v8 }
  0x78   : > { %1797 = vmatmul.mubr.msk.f32.gmra.mxu0 %vm394_vm0, %v288_v48  ;;  %1813 = vmatmul.mubr.msk.f32.gmra.mxu1 %vm394_vm0, %v288_v48 }
  0x79   : > { %597 = vmatprep.mubr.f32.mxu0 %v3554_v8  ;;  %758 = vmatprep.mubr.f32.mxu1 %v3554_v8 }
  0x7c   : > { %1798 = vmatmul.mubr.msk.f32.gmra.mxu0 %vm394_vm0, %v289_v49  ;;  %1814 = vmatmul.mubr.msk.f32.gmra.mxu1 %vm394_vm0, %v289_v49 }
  0x7d   : > { %1037 = vmatprep.mubr.f32.mxu0 %v3554_v8  ;;  %1198 = vmatprep.mubr.f32.mxu1 %v3554_v8 }
  0xbd   : > { %v2253_v50 = vpop.permute.xlu1 %381  ;;  %v2255_v51 = vpop.permute.xlu0 %391 }
  0xc1   : > { %v2257_v52 = vpop.permute.xlu1 %376  ;;  %v2259_v53 = vpop.permute.xlu0 %386 }
  0xc5   : > { %v2261_v54 = vpop.permute.xlu1 %366  ;;  %v2263_v57 = vpop.permute.xlu0 %371 }
  0xc9   : > { %v2265_v62 = vpop.permute.xlu1 %356  ;;  %v2267_v1 = vpop.permute.xlu0 %361 }
  0xcd   : > { %v2269_v6 = vpop.permute.xlu1 %346  ;;  %v2271_v10 = vpop.permute.xlu0 %351 }
  0xd1   : > { %v337_v15 = vpop.permute.xlu1 %336  ;;  %v2273_v18 = vpop.permute.xlu0 %341 }
  0xd5   : > { %v327_v23 = vpop.permute.xlu1 %326  ;;  %v332_v26 = vpop.permute.xlu0 %331 }
  0xd9   : > { %v317_v31 = vpop.permute.xlu1 %316  ;;  %v322_v34 = vpop.permute.xlu0 %321 }
 0x100   : > { %v509_v55 = vpop.f32.mrf.mxu0  ;;  %v670_v56 = vpop.f32.mrf.mxu1 }
 0x101   : > { %v2295_v35 = vadd.f32 %v509_v55, %v317_v31  ;;  %v2301_v38 = vadd.f32 %v670_v56, %v317_v31 }
 0x102   : > { %v511_v58 = vpop.f32.mrf.mxu0  ;;  %v672_v59 = vpop.f32.mrf.mxu1 }
 0x103   : > { %3686 = vst [vmem:[#allocation9_spill] sm:$0xff] %v2295_v35  ;;  %3687 = vst [vmem:[#allocation10_spill] sm:$0xff] %v2301_v38  ;;  %v2303_v39 = vadd.f32 %v511_v58, %v317_v31  ;;  %v2305_v40 = vadd.f32 %v672_v59, %v317_v31  ;;  %v2320_v47 = vmul.f32 0.01, %v2295_v35  ;;  %v2331_v58 = vmul.f32 0.01, %v2301_v38 }
 0x104   : > { %v515_v60 = vpop.f32.mrf.mxu0  ;;  %v676_v61 = vpop.f32.mrf.mxu1 }
 0x105   : > { %3688 = vst [vmem:[#allocation11_spill] sm:$0xff] %v2303_v39  ;;  %3689 = vst [vmem:[#allocation12_spill] sm:$0xff] %v2305_v40  ;;  %v2307_v41 = vadd.f32 %v515_v60, %v322_v34  ;;  %v2309_v42 = vadd.f32 %v676_v61, %v322_v34  ;;  %v2334_v59 = vmul.f32 0.01, %v2303_v39 }
 0x106   : > { %v517_v63 = vpop.f32.mrf.mxu0  ;;  %v678_v0 = vpop.f32.mrf.mxu1  ;;  %3694 = vst [vmem:[#allocation17_spill] sm:$0xff] %v2320_v47  ;;  %3697 = vst [vmem:[#allocation20_spill] sm:$0xff] %v2331_v58 }
 0x107   : > { %3690 = vst [vmem:[#allocation13_spill] sm:$0xff] %v2307_v41  ;;  %3691 = vst [vmem:[#allocation14_spill] sm:$0xff] %v2309_v42  ;;  %v2315_v45 = vadd.f32 %v517_v63, %v322_v34  ;;  %v2317_v46 = vadd.f32 %v678_v0, %v322_v34  ;;  %v2341_v63 = vmul.f32 0.01, %v2305_v40  ;;  %v2344_v0 = vmul.f32 0.01, %v2307_v41 }
 0x108   : > { %v521_v2 = vpop.f32.mrf.mxu0  ;;  %v682_v3 = vpop.f32.mrf.mxu1  ;;  %3698 = vst [vmem:[#allocation21_spill] sm:$0xff] %v2334_v59 }
 0x109   : > { %3692 = vst [vmem:[#allocation15_spill] sm:$0xff] %v2315_v45  ;;  %3693 = vst [vmem:[#allocation16_spill] sm:$0xff] %v2317_v46  ;;  %v2322_v48 = vadd.f32 %v521_v2, %v327_v23  ;;  %v2324_v49 = vadd.f32 %v682_v3, %v327_v23  ;;  %v2347_v2 = vmul.f32 0.01, %v2309_v42 }
 0x10a   : > { %v523_v4 = vpop.f32.mrf.mxu0  ;;  %v684_v5 = vpop.f32.mrf.mxu1  ;;  %3701 = vst [vmem:[#allocation24_spill] sm:$0xff] %v2341_v63  ;;  %3702 = vst [vmem:[#allocation25_spill] sm:$0xff] %v2344_v0 }
 0x10b   : > { %3695 = vst [vmem:[#allocation18_spill] sm:$0xff] %v2322_v48  ;;  %3696 = vst [vmem:[#allocation19_spill] sm:$0xff] %v2324_v49  ;;  %v2336_v60 = vadd.f32 %v523_v4, %v327_v23  ;;  %v2338_v61 = vadd.f32 %v684_v5, %v327_v23  ;;  %v2356_v4 = vmul.f32 0.01, %v2315_v45  ;;  %v2359_v5 = vmul.f32 0.01, %v2317_v46 }
 0x10c   : > { %v527_v7 = vpop.f32.mrf.mxu0  ;;  %v688_v9 = vpop.f32.mrf.mxu1  ;;  %3703 = vst [vmem:[#allocation26_spill] sm:$0xff] %v2347_v2  ;;  %v2366_v58 = vmul.f32 0.01, %v2322_v48 }
 0x10d   : > { %3699 = vst [vmem:[#allocation22_spill] sm:$0xff] %v2336_v60  ;;  %3700 = vst [vmem:[#allocation23_spill] sm:$0xff] %v2338_v61  ;;  %v2349_v3 = vadd.f32 %v527_v7, %v332_v26  ;;  %v2361_v23 = vadd.f32 %v688_v9, %v332_v26  ;;  %v2369_v7 = vmul.f32 0.01, %v2324_v49  ;;  %v2376_v0 = vmul.f32 0.01, %v2336_v60 }
 0x10e   : > { %v529_v11 = vpop.f32.mrf.mxu0  ;;  %v690_v12 = vpop.f32.mrf.mxu1  ;;  %3705 = vst [vmem:[#allocation28_spill] sm:$0xff] %v2356_v4  ;;  %3706 = vst [vmem:[#allocation29_spill] sm:$0xff] %v2359_v5  ;;  %v2379_v9 = vmul.f32 0.01, %v2338_v61 }
 0x10f   : > { %3704 = vst [vmem:[#allocation27_spill] sm:$0xff] %v2349_v3  ;;  %3707 = vst [vmem:[#allocation30_spill] sm:$0xff] %v2361_v23  ;;  %v2363_v8 = vadd.f32 %v529_v11, %v332_v26  ;;  %v2371_v47 = vadd.f32 %v690_v12, %v332_v26  ;;  %v2386_v4 = vmul.f32 0.01, %v2349_v3  ;;  %v2397_v40 = vmul.f32 0.01, %v2361_v23 }
 0x110   : > { %v533_v13 = vpop.f32.mrf.mxu0  ;;  %v694_v14 = vpop.f32.mrf.mxu1  ;;  %3709 = vst [vmem:[#allocation32_spill] sm:$0xff] %v2366_v58  ;;  %3710 = vst [vmem:[#allocation33_spill] sm:$0xff] %v2369_v7 }
 0x111   : > { %3708 = vst [vmem:[#allocation31_spill] sm:$0xff] %v2363_v8  ;;  %3711 = vst [vmem:[#allocation34_spill] sm:$0xff] %v2371_v47  ;;  %v2373_v63 = vadd.f32 %v533_v13, %v337_v15  ;;  %v2381_v11 = vadd.f32 %v694_v14, %v337_v15  ;;  %v2400_v14 = vmul.f32 0.01, %v2363_v8 }
 0x112   : > { %v535_v16 = vpop.f32.mrf.mxu0  ;;  %v696_v17 = vpop.f32.mrf.mxu1  ;;  %3713 = vst [vmem:[#allocation36_spill] sm:$0xff] %v2376_v0  ;;  %3714 = vst [vmem:[#allocation37_spill] sm:$0xff] %v2379_v9 }
 0x113   : > { %3712 = vst [vmem:[#allocation35_spill] sm:$0xff] %v2373_v63  ;;  %3715 = vst [vmem:[#allocation38_spill] sm:$0xff] %v2381_v11  ;;  %v2383_v5 = vadd.f32 %v535_v16, %v337_v15  ;;  %v2388_v38 = vadd.f32 %v696_v17, %v337_v15  ;;  %v2411_v17 = vmul.f32 0.01, %v2371_v47  ;;  %v2425_v58 = vmul.f32 0.01, %v2381_v11 }
 0x114   : > { %v539_v19 = vpop.f32.mrf.mxu0  ;;  %v700_v20 = vpop.f32.mrf.mxu1  ;;  %3717 = vst [vmem:[#allocation40_spill] sm:$0xff] %v2386_v4  ;;  %3721 = vst [vmem:[#allocation44_spill] sm:$0xff] %v2397_v40 }
 0x115   : > { %3716 = vst [vmem:[#allocation39_spill] sm:$0xff] %v2383_v5  ;;  %3718 = vst [vmem:[#allocation41_spill] sm:$0xff] %v2388_v38  ;;  %v2391_v12 = vadd.f32 %v539_v19, %v2273_v18  ;;  %v2394_v13 = vadd.f32 %v700_v20, %v2273_v18  ;;  %v2414_v19 = vmul.f32 0.01, %v2373_v63  ;;  %v2439_v9 = vmul.f32 0.01, %v2388_v38 }
 0x116   : > { %v2275_v21 = vpop.f32.mrf.mxu0  ;;  %v2277_v22 = vpop.f32.mrf.mxu1  ;;  %3722 = vst [vmem:[#allocation45_spill] sm:$0xff] %v2400_v14  ;;  %3725 = vst [vmem:[#allocation48_spill] sm:$0xff] %v2411_v17 }
 0x117   : > { %3719 = vst [vmem:[#allocation42_spill] sm:$0xff] %v2391_v12  ;;  %3720 = vst [vmem:[#allocation43_spill] sm:$0xff] %v2394_v13  ;;  %v2404_v16 = vadd.f32 %v2275_v21, %v2273_v18  ;;  %v2408_v15 = vadd.f32 %v2277_v22, %v2273_v18  ;;  %v2428_v18 = vmul.f32 0.01, %v2383_v5  ;;  %v2445_v0 = vmul.f32 0.01, %v2394_v13 }
 0x118   : > { %v2279_v24 = vpop.f32.mrf.mxu0  ;;  %v2281_v25 = vpop.f32.mrf.mxu1  ;;  %3726 = vst [vmem:[#allocation49_spill] sm:$0xff] %v2414_v19  ;;  %3729 = vst [vmem:[#allocation52_spill] sm:$0xff] %v2425_v58 }
 0x119   : > { %3723 = vst [vmem:[#allocation46_spill] sm:$0xff] %v2404_v16  ;;  %3724 = vst [vmem:[#allocation47_spill] sm:$0xff] %v2408_v15  ;;  %v2418_v20 = vadd.f32 %v2279_v24, %v2269_v6  ;;  %v2422_v39 = vadd.f32 %v2281_v25, %v2269_v6  ;;  %v2442_v25 = vmul.f32 0.01, %v2391_v12  ;;  %v2452_v46 = vmul.f32 0.01, %v2404_v16 }
 0x11a   : > { %v2283_v27 = vpop.f32.mrf.mxu0  ;;  %v2285_v28 = vpop.f32.mrf.mxu1  ;;  %3730 = vst [vmem:[#allocation53_spill] sm:$0xff] %v2428_v18  ;;  %3733 = vst [vmem:[#allocation56_spill] sm:$0xff] %v2439_v9 }
 0x11b   : > { %3727 = vst [vmem:[#allocation50_spill] sm:$0xff] %v2418_v20  ;;  %3728 = vst [vmem:[#allocation51_spill] sm:$0xff] %v2422_v39  ;;  %v2432_v22 = vadd.f32 %v2283_v27, %v2269_v6  ;;  %v2436_v24 = vadd.f32 %v2285_v28, %v2269_v6  ;;  %v2455_v6 = vmul.f32 0.01, %v2408_v15  ;;  %v2466_v40 = vmul.f32 0.01, %v2418_v20 }
 0x11c   : > { %v2287_v29 = vpop.f32.mrf.mxu0  ;;  %v2289_v30 = vpop.f32.mrf.mxu1  ;;  %3734 = vst [vmem:[#allocation57_spill] sm:$0xff] %v2442_v25  ;;  %3735 = vst [vmem:[#allocation58_spill] sm:$0xff] %v2445_v0 }
 0x11d   : > { %3731 = vst [vmem:[#allocation54_spill] sm:$0xff] %v2432_v22  ;;  %3732 = vst [vmem:[#allocation55_spill] sm:$0xff] %v2436_v24  ;;  %v2449_v42 = vadd.f32 %v2287_v29, %v2271_v10  ;;  %v2459_v28 = vadd.f32 %v2289_v30, %v2271_v10  ;;  %v2469_v29 = vmul.f32 0.01, %v2422_v39  ;;  %v2480_v49 = vmul.f32 0.01, %v2432_v22 }
 0x11e   : > { %v2291_v32 = vpop.f32.mrf.mxu0  ;;  %v2293_v33 = vpop.f32.mrf.mxu1  ;;  %3737 = vst [vmem:[#allocation60_spill] sm:$0xff] %v2452_v46  ;;  %3738 = vst [vmem:[#allocation61_spill] sm:$0xff] %v2455_v6 }
 0x11f   : > { %3736 = vst [vmem:[#allocation59_spill] sm:$0xff] %v2449_v42  ;;  %3739 = vst [vmem:[#allocation62_spill] sm:$0xff] %v2459_v28  ;;  %v2463_v45 = vadd.f32 %v2291_v32, %v2271_v10  ;;  %v2473_v4 = vadd.f32 %v2293_v33, %v2271_v10  ;;  %v2483_v32 = vmul.f32 0.01, %v2436_v24  ;;  %v2494_v33 = vmul.f32 0.01, %v2449_v42 }
 0x120   : > { %v2297_v36 = vpop.f32.mrf.mxu0  ;;  %v2299_v37 = vpop.f32.mrf.mxu1  ;;  %3741 = vst [vmem:[#allocation64_spill] sm:$0xff] %v2466_v40  ;;  %3742 = vst [vmem:[#allocation65_spill] sm:$0xff] %v2469_v29 }
 0x121   : > { %3740 = vst [vmem:[#allocation63_spill] sm:$0xff] %v2463_v45  ;;  %3743 = vst [vmem:[#allocation66_spill] sm:$0xff] %v2473_v4  ;;  %v2477_v17 = vadd.f32 %v2297_v36, %v2265_v62  ;;  %v2487_v48 = vadd.f32 %v2299_v37, %v2265_v62  ;;  %v2512_v19 = vmul.f32 0.01, %v2463_v45 }
 0x122   : > { %v2311_v43 = vpop.f32.mrf.mxu0  ;;  %v2313_v44 = vpop.f32.mrf.mxu1  ;;  %3744 = vst [vmem:[#allocation67_spill] sm:$0xff] %v2480_v49  ;;  %3745 = vst [vmem:[#allocation68_spill] sm:$0xff] %v2483_v32 }
 0x123   : > { %v2491_v10 = vadd.f32 %v2311_v43, %v2265_v62  ;;  %3746 = vst [vmem:[#allocation69_spill] sm:$0xff] %v2494_v33  ;;  %v2498_v36 = vadd.f32 %v2313_v44, %v2265_v62  ;;  %v2509_v43 = vmul.f32 0.01, %v2459_v28  ;;  %3748 = vst [vmem:[#allocation71_spill] sm:$0xff] %v2512_v19 }
 0x124   : > { %v2326_v55 = vpop.f32.mrf.mxu0  ;;  %v2328_v56 = vpop.f32.mrf.mxu1 }
 0x125   : > { %v2502_v61 = vadd.f32 %v2326_v55, %v2267_v1  ;;  %v2506_v60 = vadd.f32 %v2328_v56, %v2267_v1  ;;  %3747 = vst [vmem:[#allocation70_spill] sm:$0xff] %v2509_v43  ;;  %v2523_v55 = vmul.f32 0.01, %v2473_v4  ;;  %v2526_v56 = vmul.f32 0.01, %v2477_v17 }
 0x126   : > { %v2351_v31 = vpop.f32.mrf.mxu0  ;;  %v2353_v34 = vpop.f32.mrf.mxu1 }
 0x127   : > { %v2516_v62 = vadd.f32 %v2351_v31, %v2267_v1  ;;  %v2520_v44 = vadd.f32 %v2353_v34, %v2267_v1  ;;  %3749 = vst [vmem:[#allocation72_spill] sm:$0xff] %v2523_v55  ;;  %3750 = vst [vmem:[#allocation73_spill] sm:$0xff] %v2526_v56  ;;  %v2535_v31 = vmul.f32 0.01, %v2487_v48  ;;  %v2538_v1 = vmul.f32 0.01, %v2491_v10 }
 0x128   : > { %v569_v59 = vpop.f32.mrf.mxu0  ;;  %v730_v2 = vpop.f32.mrf.mxu1  ;;  %v2553_v8 = vmul.f32 0.01, %v2506_v60 }
 0x129   : > { %v2529_v9 = vadd.f32 %v569_v59, %v2261_v54  ;;  %v2532_v18 = vadd.f32 %v730_v2, %v2261_v54  ;;  %3751 = vst [vmem:[#allocation74_spill] sm:$0xff] %v2535_v31  ;;  %3752 = vst [vmem:[#allocation75_spill] sm:$0xff] %v2538_v1  ;;  %v2547_v59 = vmul.f32 0.01, %v2498_v36  ;;  %v2550_v2 = vmul.f32 0.01, %v2502_v61 }
 0x12a   : > { %v571_v26 = vpop.f32.mrf.mxu0  ;;  %v732_v35 = vpop.f32.mrf.mxu1  ;;  %3755 = vst [vmem:[#allocation78_spill] sm:$0xff] %v2553_v8 }
 0x12b   : > { %v2541_v34 = vadd.f32 %v571_v26, %v2261_v54  ;;  %v2544_v47 = vadd.f32 %v732_v35, %v2261_v54  ;;  %3753 = vst [vmem:[#allocation76_spill] sm:$0xff] %v2547_v59  ;;  %3754 = vst [vmem:[#allocation77_spill] sm:$0xff] %v2550_v2  ;;  %v2559_v26 = vmul.f32 0.01, %v2516_v62  ;;  %v2562_v54 = vmul.f32 0.01, %v2520_v44 }
 0x12c   : > { %v575_v21 = vpop.f32.mrf.mxu0  ;;  %v736_v7 = vpop.f32.mrf.mxu1  ;;  %v2571_v11 = vmul.f32 0.01, %v2529_v9 }
 0x12d   : > { %v2556_v0 = vadd.f32 %v575_v21, %v2263_v57  ;;  %v2565_v35 = vadd.f32 %v736_v7, %v2263_v57  ;;  %v2574_v21 = vmul.f32 0.01, %v2532_v18  ;;  %v2583_v7 = vmul.f32 0.01, %v2541_v34 }
 0x12e   : > { %v577_v41 = vpop.f32.mrf.mxu0  ;;  %v738_v27 = vpop.f32.mrf.mxu1 }
 0x12f   : > { %v2568_v46 = vadd.f32 %v577_v41, %v2263_v57  ;;  %v2577_v63 = vadd.f32 %v738_v27, %v2263_v57  ;;  %v2586_v41 = vmul.f32 0.01, %v2544_v47  ;;  %v2595_v57 = vmul.f32 0.01, %v2556_v0 }
 0x130   : > { %v581_v30 = vpop.f32.mrf.mxu0  ;;  %v742_v14 = vpop.f32.mrf.mxu1 }
 0x131   : > { %v2580_v38 = vadd.f32 %v581_v30, %v2257_v52  ;;  %v2589_v40 = vadd.f32 %v742_v14, %v2257_v52  ;;  %v2607_v14 = vmul.f32 0.01, %v2565_v35 }
 0x132   : > { %v583_v37 = vpop.f32.mrf.mxu0  ;;  %v744_v58 = vpop.f32.mrf.mxu1 }
 0x133   : > { %v2592_v32 = vadd.f32 %v583_v37, %v2257_v52  ;;  %v2598_v27 = vadd.f32 %v744_v58, %v2257_v52  ;;  %v2610_v37 = vmul.f32 0.01, %v2568_v46  ;;  %v2619_v58 = vmul.f32 0.01, %v2577_v63 }
 0x134   : > { %v587_v23 = vpop.f32.mrf.mxu0  ;;  %v748_v3 = vpop.f32.mrf.mxu1  ;;  %v2627_v55 = vmul.f32 0.01, %v2589_v40  ;;  %vm813_vm15 = vcmp.ge.f32.partialorder %v2580_v38, 0.0  ;;  %vm815_vm0 = vcmp.ge.f32.partialorder %v2589_v40, 0.0 }
 0x135   : > { %v2601_v30 = vadd.f32 %v587_v23, %v2253_v50  ;;  %v2604_v49 = vadd.f32 %v748_v3, %v2253_v50  ;;  %v2622_v3 = vmul.f32 0.01, %v2580_v38  ;;  %v2635_v19 = vmul.f32 0.01, %v2598_v27 }
 0x136   : > { %v589_v25 = vpop.f32.mrf.mxu0  ;;  %v750_v6 = vpop.f32.mrf.mxu1  ;;  %vm814_vm13 = vcmp.ge.f32.partialorder %v2592_v32, 0.0  ;;  %vm816_vm14 = vcmp.ge.f32.partialorder %v2598_v27, 0.0 }
 0x137   : > { %v2613_v15 = vadd.f32 %v589_v25, %v2253_v50  ;;  %v2616_v52 = vadd.f32 %v750_v6, %v2253_v50  ;;  %v2630_v25 = vmul.f32 0.01, %v2592_v32  ;;  %v881_v39 = vmul.f32 0.01, %v2601_v30 }
 0x138   : > { %v593_v5 = vpop.f32.mrf.mxu0  ;;  %v754_v29 = vpop.f32.mrf.mxu1  ;;  %vm817_vm11 = vcmp.ge.f32.partialorder %v2601_v30, 0.0  ;;  %vm819_vm12 = vcmp.ge.f32.partialorder %v2604_v49, 0.0 }
 0x139   : > { %v882_v24 = vmul.f32 0.01, %v2613_v15  ;;  %v884_v22 = vmul.f32 0.01, %v2616_v52  ;;  %v594_v31 = vadd.f32 %v593_v5, %v2259_v53  ;;  %v755_v56 = vadd.f32 %v754_v29, %v2259_v53 }
 0x13a   : > { %v595_v13 = vpop.f32.mrf.mxu0  ;;  %v756_v12 = vpop.f32.mrf.mxu1  ;;  %vm818_vm9 = vcmp.ge.f32.partialorder %v2613_v15, 0.0  ;;  %vm820_vm10 = vcmp.ge.f32.partialorder %v2616_v52, 0.0 }
 0x13b   : > { %v596_v23 = vadd.f32 %v595_v13, %v2259_v53  ;;  %v757_v16 = vadd.f32 %v756_v12, %v2259_v53  ;;  %v883_v13 = vmul.f32 0.01, %v2604_v49  ;;  %v885_v8 = vmul.f32 0.01, %v594_v31 }
 0x13c   : > { %v599_v43 = vpop.f32.mrf.mxu0  ;;  %v760_v33 = vpop.f32.mrf.mxu1  ;;  %v887_v2 = vmul.f32 0.01, %v755_v56  ;;  %vm821_vm7 = vcmp.ge.f32.partialorder %v594_v31, 0.0  ;;  %vm823_vm8 = vcmp.ge.f32.partialorder %v755_v56, 0.0 }
 0x13d   : > { %v600_v50 = vadd.f32 %v599_v43, %v2255_v51  ;;  %v761_v6 = vadd.f32 %v760_v33, %v2255_v51  ;;  %v886_v43 = vmul.f32 0.01, %v596_v23  ;;  %v888_v59 = vmul.f32 0.01, %v757_v16 }
 0x13e   : > { %v601_v12 = vpop.f32.mrf.mxu0  ;;  %v762_v20 = vpop.f32.mrf.mxu1  ;;  %vm822_vm5 = vcmp.ge.f32.partialorder %v596_v23, 0.0  ;;  %vm824_vm6 = vcmp.ge.f32.partialorder %v757_v16, 0.0 }
 0x13f   : > { %v602_v33 = vadd.f32 %v601_v12, %v2255_v51  ;;  %v763_v1 = vadd.f32 %v762_v20, %v2255_v51  ;;  %vm825_vm1 = vcmp.ge.f32.partialorder %v600_v50, 0.0  ;;  %v889_v28 = vmul.f32 0.01, %v600_v50 }
 0x140   : > { %vm827_vm2 = vcmp.ge.f32.partialorder %v761_v6, 0.0  ;;  %v891_v42 = vmul.f32 0.01, %v761_v6  ;;  %v950_v29 = vsel %vm822_vm5, %v596_v23, %v886_v43  ;;  %vm806_vm5 = vcmp.ge.f32.partialorder %v2541_v34, 0.0  ;;  %v3776_v23 = vld [vmem:[#allocation42_spill] sm:$0xff]  ;;  %v3780_v43 = vld [vmem:[#allocation64_spill] sm:$0xff] }
 0x141   : > { %v890_v4 = vmul.f32 0.01, %v602_v33  ;;  %v892_v45 = vmul.f32 0.01, %v763_v1  ;;  %vm826_vm3 = vcmp.ge.f32.partialorder %v602_v33, 0.0  ;;  %vm828_vm4 = vcmp.ge.f32.partialorder %v763_v1, 0.0 }
 0x142   : > { %v953_v51 = vsel %vm825_vm1, %v600_v50, %v889_v28  ;;  %v955_v20 = vsel %vm827_vm2, %v761_v6, %v891_v42  ;;  %v951_v42 = vsel %vm823_vm8, %v755_v56, %v887_v2  ;;  %v945_v28 = vsel %vm817_vm11, %v2601_v30, %v881_v39  ;;  %v3763_v2 = vld [vmem:[#allocation76_spill] sm:$0xff]  ;;  %v3772_v30 = vld [vmem:[#allocation69_spill] sm:$0xff]  ;;  %v3778_v50 = vld [vmem:[#allocation67_spill] sm:$0xff] }
 0x143   : > { %v954_v53 = vsel %vm826_vm3, %v602_v33, %v890_v4  ;;  %v956_v5 = vsel %vm828_vm4, %v763_v1, %v892_v45  ;;  %v952_v45 = vsel %vm824_vm6, %v757_v16, %v888_v59  ;;  %v949_v4 = vsel %vm821_vm7, %v594_v31, %v885_v8  ;;  %v3758_v1 = vld [vmem:[#allocation63_spill] sm:$0xff]  ;;  %v3761_v59 = vld [vmem:[#allocation62_spill] sm:$0xff] }
 0x144   : > { %973 = vmatprep.subr.mxu0 %v954_v53  ;;  %1134 = vmatprep.subr.mxu1 %v956_v5  ;;  %v946_v16 = vsel %vm818_vm9, %v2613_v15, %v882_v24  ;;  %v948_v8 = vsel %vm820_vm10, %v2616_v52, %v884_v22  ;;  %v947_v56 = vsel %vm819_vm12, %v2604_v49, %v883_v13  ;;  %vm810_vm1 = vcmp.ge.f32.partialorder %v2568_v46, 0.0  ;;  %v3779_v13 = vld [vmem:[#allocation68_spill] sm:$0xff]  ;;  %v3781_v53 = vld [vmem:[#allocation65_spill] sm:$0xff] }
 0x145   : > { %974 = vmatpush1.msra.mxu0 %v953_v51  ;;  %1135 = vmatpush1.msra.mxu1 %v955_v20  ;;  %vm812_vm2 = vcmp.ge.f32.partialorder %v2577_v63, 0.0  ;;  %vm809_vm3 = vcmp.ge.f32.partialorder %v2556_v0, 0.0  ;;  %vm811_vm4 = vcmp.ge.f32.partialorder %v2565_v35, 0.0  ;;  %v942_v15 = vsel %vm814_vm13, %v2592_v32, %v2630_v25  ;;  %v3777_v25 = vld [vmem:[#allocation43_spill] sm:$0xff]  ;;  %v3783_v20 = vld [vmem:[#allocation41_spill] sm:$0xff] }
 0x146   : > { %975 = vmatprep.subr.mxu0 %v950_v29  ;;  %1136 = vmatprep.subr.mxu1 %v952_v45  ;;  %v944_v39 = vsel %vm816_vm14, %v2598_v27, %v2635_v19  ;;  %v941_v49 = vsel %vm813_vm15, %v2580_v38, %v2622_v3  ;;  %v943_v22 = vsel %vm815_vm0, %v2589_v40, %v2627_v55  ;;  %vm808_vm6 = vcmp.ge.f32.partialorder %v2544_v47, 0.0  ;;  %v3757_v55 = vld [vmem:[#allocation78_spill] sm:$0xff]  ;;  %v3771_v27 = vld [vmem:[#allocation72_spill] sm:$0xff]  ;;  %v3775_v3 = vld [vmem:[#allocation47_spill] sm:$0xff] }
 0x147   : > { %976 = vmatpush1.msra.mxu0 %v949_v4  ;;  %1137 = vmatpush1.msra.mxu1 %v951_v42  ;;  %vm805_vm7 = vcmp.ge.f32.partialorder %v2529_v9, 0.0  ;;  %vm807_vm8 = vcmp.ge.f32.partialorder %v2532_v18, 0.0  ;;  %v938_v38 = vsel %vm810_vm1, %v2568_v46, %v2610_v37  ;;  %v940_v40 = vsel %vm812_vm2, %v2577_v63, %v2619_v58  ;;  %v3773_v37 = vld [vmem:[#allocation70_spill] sm:$0xff]  ;;  %v3782_v51 = vld [vmem:[#allocation39_spill] sm:$0xff]  ;;  %v3786_v4 = vld [vmem:[#allocation60_spill] sm:$0xff] }
 0x148   : > { %977 = vmatprep.subr.mxu0 %v946_v16  ;;  %1138 = vmatprep.subr.mxu1 %v948_v8  ;;  %v937_v19 = vsel %vm809_vm3, %v2556_v0, %v2595_v57  ;;  %v939_v24 = vsel %vm811_vm4, %v2565_v35, %v2607_v14  ;;  %vm802_vm9 = vcmp.ge.f32.partialorder %v2516_v62, 0.0  ;;  %vm804_vm10 = vcmp.ge.f32.partialorder %v2520_v44, 0.0  ;;  %v3765_v35 = vld [vmem:[#allocation74_spill] sm:$0xff]  ;;  %v3769_v57 = vld [vmem:[#allocation51_spill] sm:$0xff]  ;;  %v3787_v16 = vld [vmem:[#allocation61_spill] sm:$0xff] }
 0x149   : > { %978 = vmatpush1.msra.mxu0 %v945_v28  ;;  %1139 = vmatpush1.msra.mxu1 %v947_v56  ;;  %vm801_vm11 = vcmp.ge.f32.partialorder %v2502_v61, 0.0  ;;  %vm803_vm12 = vcmp.ge.f32.partialorder %v2506_v60, 0.0  ;;  %v934_v46 = vsel %vm806_vm5, %v2541_v34, %v2583_v7  ;;  %v936_v63 = vsel %vm808_vm6, %v2544_v47, %v2586_v41  ;;  %v3760_v34 = vld [vmem:[#allocation59_spill] sm:$0xff]  ;;  %v3766_v7 = vld [vmem:[#allocation54_spill] sm:$0xff]  ;;  %v3788_v28 = vld [vmem:[#allocation57_spill] sm:$0xff] }
 0x14a   : > { %979 = vmatprep.subr.mxu0 %v942_v15  ;;  %1140 = vmatprep.subr.mxu1 %v944_v39  ;;  %v933_v0 = vsel %vm805_vm7, %v2529_v9, %v2571_v11  ;;  %v935_v32 = vsel %vm807_vm8, %v2532_v18, %v2574_v21  ;;  %vm798_vm13 = vcmp.ge.f32.partialorder %v2491_v10, 0.0  ;;  %vm800_vm14 = vcmp.ge.f32.partialorder %v2498_v36, 0.0  ;;  %v3756_v11 = vld [vmem:[#allocation77_spill] sm:$0xff]  ;;  %v3768_v41 = vld [vmem:[#allocation50_spill] sm:$0xff]  ;;  %v3784_v29 = vld [vmem:[#allocation35_spill] sm:$0xff] }
 0x14b   : > { %980 = vmatpush1.msra.mxu0 %v941_v49  ;;  %1141 = vmatpush1.msra.mxu1 %v943_v22  ;;  %vm797_vm15 = vcmp.ge.f32.partialorder %v2477_v17, 0.0  ;;  %vm799_vm0 = vcmp.ge.f32.partialorder %v2487_v48, 0.0  ;;  %v930_v47 = vsel %vm802_vm9, %v2516_v62, %v2559_v26  ;;  %v932_v9 = vsel %vm804_vm10, %v2520_v44, %v2562_v54  ;;  %v3759_v62 = vld [vmem:[#allocation66_spill] sm:$0xff]  ;;  %v3762_v44 = vld [vmem:[#allocation75_spill] sm:$0xff]  ;;  %v3764_v26 = vld [vmem:[#allocation73_spill] sm:$0xff] }
 0x14c   : > { %981 = vmatprep.subr.mxu0 %v938_v38  ;;  %1142 = vmatprep.subr.mxu1 %v940_v40  ;;  %v929_v18 = vsel %vm801_vm11, %v2502_v61, %v3756_v11  ;;  %v931_v31 = vsel %vm803_vm12, %v2506_v60, %v3757_v55  ;;  %vm794_vm1 = vcmp.ge.f32.partialorder %v3758_v1, 0.0  ;;  %vm796_vm2 = vcmp.ge.f32.partialorder %v3759_v62, 0.0  ;;  %v3774_v58 = vld [vmem:[#allocation46_spill] sm:$0xff]  ;;  %v3790_v49 = vld [vmem:[#allocation31_spill] sm:$0xff] }
 0x14d   : > { %982 = vmatpush1.msra.mxu0 %v937_v19  ;;  %1143 = vmatpush1.msra.mxu1 %v939_v24  ;;  %vm793_vm3 = vcmp.ge.f32.partialorder %v3760_v34, 0.0  ;;  %vm795_vm4 = vcmp.ge.f32.partialorder %v3761_v59, 0.0  ;;  %v926_v61 = vsel %vm798_vm13, %v2491_v10, %v3762_v44  ;;  %v928_v60 = vsel %vm800_vm14, %v2498_v36, %v3763_v2  ;;  %v3767_v10 = vld [vmem:[#allocation55_spill] sm:$0xff]  ;;  %v3785_v45 = vld [vmem:[#allocation38_spill] sm:$0xff]  ;;  %v3794_v19 = vld [vmem:[#allocation53_spill] sm:$0xff] }
 0x14e   : > { %983 = vmatprep.subr.mxu0 %v934_v46  ;;  %1144 = vmatprep.subr.mxu1 %v936_v63  ;;  %v925_v54 = vsel %vm797_vm15, %v2477_v17, %v3764_v26  ;;  %v927_v21 = vsel %vm799_vm0, %v2487_v48, %v3765_v35  ;;  %vm790_vm5 = vcmp.ge.f32.partialorder %v3766_v7, 0.0  ;;  %vm792_vm6 = vcmp.ge.f32.partialorder %v3767_v10, 0.0  ;;  %v3770_v36 = vld [vmem:[#allocation71_spill] sm:$0xff]  ;;  %v3789_v15 = vld [vmem:[#allocation58_spill] sm:$0xff]  ;;  %v3795_v46 = vld [vmem:[#allocation56_spill] sm:$0xff] }
 0x14f   : > { %984 = vmatpush1.msra.mxu0 %v933_v0  ;;  %1145 = vmatpush1.msra.mxu1 %v935_v32  ;;  %vm789_vm7 = vcmp.ge.f32.partialorder %v3768_v41, 0.0  ;;  %vm791_vm8 = vcmp.ge.f32.partialorder %v3769_v57, 0.0  ;;  %v922_v17 = vsel %vm794_vm1, %v3758_v1, %v3770_v36  ;;  %v924_v48 = vsel %vm796_vm2, %v3759_v62, %v3771_v27  ;;  %v3791_v22 = vld [vmem:[#allocation34_spill] sm:$0xff]  ;;  %v3792_v38 = vld [vmem:[#allocation27_spill] sm:$0xff]  ;;  %v3796_v0 = vld [vmem:[#allocation49_spill] sm:$0xff] }
 0x150   : > { %985 = vmatprep.subr.mxu0 %v930_v47  ;;  %1146 = vmatprep.subr.mxu1 %v932_v9  ;;  %v921_v14 = vsel %vm793_vm3, %v3760_v34, %v3772_v30  ;;  %v923_v52 = vsel %vm795_vm4, %v3761_v59, %v3773_v37  ;;  %vm786_vm9 = vcmp.ge.f32.partialorder %v3774_v58, 0.0  ;;  %vm788_vm10 = vcmp.ge.f32.partialorder %v3775_v3, 0.0  ;;  %v3793_v40 = vld [vmem:[#allocation30_spill] sm:$0xff]  ;;  %v3797_v47 = vld [vmem:[#allocation52_spill] sm:$0xff]  ;;  %v3802_v1 = vld [vmem:[#allocation45_spill] sm:$0xff] }
 0x151   : > { %986 = vmatpush1.msra.mxu0 %v929_v18  ;;  %1147 = vmatpush1.msra.mxu1 %v931_v31  ;;  %vm785_vm11 = vcmp.ge.f32.partialorder %v3776_v23, 0.0  ;;  %vm787_vm12 = vcmp.ge.f32.partialorder %v3777_v25, 0.0  ;;  %v918_v6 = vsel %vm790_vm5, %v3766_v7, %v3778_v50  ;;  %v920_v12 = vsel %vm792_vm6, %v3767_v10, %v3779_v13  ;;  %v3798_v11 = vld [vmem:[#allocation22_spill] sm:$0xff]  ;;  %v3799_v18 = vld [vmem:[#allocation23_spill] sm:$0xff]  ;;  %v3803_v34 = vld [vmem:[#allocation48_spill] sm:$0xff] }
 0x152   : > { %987 = vmatprep.subr.mxu0 %v926_v61  ;;  %1148 = vmatprep.subr.mxu1 %v928_v60  ;;  %v917_v33 = vsel %vm789_vm7, %v3768_v41, %v3780_v43  ;;  %v919_v5 = vsel %vm791_vm8, %v3769_v57, %v3781_v53  ;;  %vm782_vm13 = vcmp.ge.f32.partialorder %v3782_v51, 0.0  ;;  %vm784_vm14 = vcmp.ge.f32.partialorder %v3783_v20, 0.0  ;;  %v3800_v55 = vld [vmem:[#allocation18_spill] sm:$0xff]  ;;  %v3801_v31 = vld [vmem:[#allocation19_spill] sm:$0xff]  ;;  %v3804_v44 = vld [vmem:[#allocation40_spill] sm:$0xff] }
 0x153   : > { %988 = vmatpush1.msra.mxu0 %v925_v54  ;;  %1149 = vmatpush1.msra.mxu1 %v927_v21  ;;  %vm781_vm15 = vcmp.ge.f32.partialorder %v3784_v29, 0.0  ;;  %vm783_vm0 = vcmp.ge.f32.partialorder %v3785_v45, 0.0  ;;  %v914_v42 = vsel %vm786_vm9, %v3774_v58, %v3786_v4  ;;  %v916_v8 = vsel %vm788_vm10, %v3775_v3, %v3787_v16  ;;  %v3805_v2 = vld [vmem:[#allocation44_spill] sm:$0xff]  ;;  %v3806_v26 = vld [vmem:[#allocation15_spill] sm:$0xff]  ;;  %v3808_v35 = vld [vmem:[#allocation13_spill] sm:$0xff] }
 0x154   : > { %989 = vmatprep.subr.mxu0 %v922_v17  ;;  %1150 = vmatprep.subr.mxu1 %v924_v48  ;;  %v913_v56 = vsel %vm785_vm11, %v3776_v23, %v3788_v28  ;;  %v915_v39 = vsel %vm787_vm12, %v3777_v25, %v3789_v15  ;;  %vm778_vm1 = vcmp.ge.f32.partialorder %v3790_v49, 0.0  ;;  %vm780_vm2 = vcmp.ge.f32.partialorder %v3791_v22, 0.0  ;;  %v3807_v54 = vld [vmem:[#allocation16_spill] sm:$0xff]  ;;  %v3809_v21 = vld [vmem:[#allocation14_spill] sm:$0xff]  ;;  %v3811_v41 = vld [vmem:[#allocation37_spill] sm:$0xff] }
 0x155   : > { %990 = vmatpush1.msra.mxu0 %v921_v14  ;;  %1151 = vmatpush1.msra.mxu1 %v923_v52  ;;  %vm777_vm3 = vcmp.ge.f32.partialorder %v3792_v38, 0.0  ;;  %vm779_vm4 = vcmp.ge.f32.partialorder %v3793_v40, 0.0  ;;  %v910_v24 = vsel %vm782_vm13, %v3782_v51, %v3794_v19  ;;  %v912_v63 = vsel %vm784_vm14, %v3783_v20, %v3795_v46  ;;  %v3810_v7 = vld [vmem:[#allocation36_spill] sm:$0xff]  ;;  %v3813_v27 = vld [vmem:[#allocation33_spill] sm:$0xff]  ;;  %v3814_v30 = vld [vmem:[#allocation11_spill] sm:$0xff] }
 0x156   : > { %991 = vmatprep.subr.mxu0 %v918_v6  ;;  %1152 = vmatprep.subr.mxu1 %v920_v12  ;;  %v909_v32 = vsel %vm781_vm15, %v3784_v29, %v3796_v0  ;;  %v911_v9 = vsel %vm783_vm0, %v3785_v45, %v3797_v47  ;;  %vm774_vm5 = vcmp.ge.f32.partialorder %v3798_v11, 0.0  ;;  %vm776_vm6 = vcmp.ge.f32.partialorder %v3799_v18, 0.0  ;;  %v3812_v36 = vld [vmem:[#allocation32_spill] sm:$0xff]  ;;  %v3816_v37 = vld [vmem:[#allocation9_spill] sm:$0xff]  ;;  %v3817_v52 = vld [vmem:[#allocation10_spill] sm:$0xff] }
 0x157   : > { %992 = vmatpush1.msra.mxu0 %v917_v33  ;;  %1153 = vmatpush1.msra.mxu1 %v919_v5  ;;  %vm773_vm7 = vcmp.ge.f32.partialorder %v3800_v55, 0.0  ;;  %vm775_vm8 = vcmp.ge.f32.partialorder %v3801_v31, 0.0  ;;  %v906_v62 = vsel %vm778_vm1, %v3790_v49, %v3802_v1  ;;  %v908_v59 = vsel %vm780_vm2, %v3791_v22, %v3803_v34  ;;  %v3815_v14 = vld [vmem:[#allocation12_spill] sm:$0xff]  ;;  %v3819_v23 = vld [vmem:[#allocation29_spill] sm:$0xff]  ;;  %v3821_v13 = vld [vmem:[#allocation26_spill] sm:$0xff] }
 0x158   : > { %993 = vmatprep.subr.mxu0 %v914_v42  ;;  %1154 = vmatprep.subr.mxu1 %v916_v8  ;;  %v905_v61 = vsel %vm777_vm3, %v3792_v38, %v3804_v44  ;;  %v907_v60 = vsel %vm779_vm4, %v3793_v40, %v3805_v2  ;;  %vm770_vm9 = vcmp.ge.f32.partialorder %v3806_v26, 0.0  ;;  %vm772_vm10 = vcmp.ge.f32.partialorder %v3807_v54, 0.0  ;;  %v3818_v58 = vld [vmem:[#allocation28_spill] sm:$0xff]  ;;  %v3820_v50 = vld [vmem:[#allocation25_spill] sm:$0xff]  ;;  %v959_v8 = vld [vmem:[#allocation3 + $0x10] sm:$0xff] }
 0x159   : > { %994 = vmatpush1.msra.mxu0 %v913_v56  ;;  %1155 = vmatpush1.msra.mxu1 %v915_v39  ;;  %vm769_vm11 = vcmp.ge.f32.partialorder %v3808_v35, 0.0  ;;  %vm771_vm12 = vcmp.ge.f32.partialorder %v3809_v21, 0.0  ;;  %v902_v10 = vsel %vm774_vm5, %v3798_v11, %v3810_v7  ;;  %v904_v57 = vsel %vm776_vm6, %v3799_v18, %v3811_v41  ;;  %v3822_v43 = vld [vmem:[#allocation21_spill] sm:$0xff]  ;;  %v3823_v53 = vld [vmem:[#allocation24_spill] sm:$0xff]  ;;  %v960_v28 = vld [vmem:[#allocation3 + $0x18] sm:$0xff] }
 0x15a   : > { %995 = vmatprep.subr.mxu0 %v910_v24  ;;  %1156 = vmatprep.subr.mxu1 %v912_v63  ;;  %v901_v17 = vsel %vm773_vm7, %v3800_v55, %v3812_v36  ;;  %v903_v48 = vsel %vm775_vm8, %v3801_v31, %v3813_v27  ;;  %vm766_vm13 = vcmp.ge.f32.partialorder %v3814_v30, 0.0  ;;  %vm768_vm14 = vcmp.ge.f32.partialorder %v3815_v14, 0.0  ;;  %v957_v51 = vld [vmem:[#allocation3] sm:$0xff]  ;;  %v3824_v20 = vld [vmem:[#allocation17_spill] sm:$0xff]  ;;  %v963_v39 = vld [vmem:[#allocation3 + $0x30] sm:$0xff] }
 0x15b   : > { %996 = vmatpush1.msra.mxu0 %v909_v32  ;;  %1157 = vmatpush1.msra.mxu1 %v911_v9  ;;  %vm765_vm15 = vcmp.ge.f32.partialorder %v3816_v37, 0.0  ;;  %vm767_vm0 = vcmp.ge.f32.partialorder %v3817_v52, 0.0  ;;  %v898_v3 = vsel %vm770_vm9, %v3806_v26, %v3818_v58  ;;  %v900_v25 = vsel %vm772_vm10, %v3807_v54, %v3819_v23  ;;  %v3825_v45 = vld [vmem:[#allocation20_spill] sm:$0xff]  ;;  %v958_v16 = vld [vmem:[#allocation3 + $0x8] sm:$0xff]  ;;  %v964_v49 = vld [vmem:[#allocation3 + $0x38] sm:$0xff] }
 0x15c   : > { %997 = vmatprep.subr.mxu0 %v906_v62  ;;  %1158 = vmatprep.subr.mxu1 %v908_v59  ;;  %v897_v6 = vsel %vm769_vm11, %v3808_v35, %v3820_v50  ;;  %v899_v12 = vsel %vm771_vm12, %v3809_v21, %v3821_v13  ;;  %v894_v33 = vsel %vm766_vm13, %v3814_v30, %v3822_v43  ;;  %v3826_v42 = vmov 0.0   ;;  %v961_v56 = vld [vmem:[#allocation3 + $0x20] sm:$0xff]  ;;  %v962_v15 = vld [vmem:[#allocation3 + $0x28] sm:$0xff]  ;;  %v967_v40 = vld [vmem:[#allocation3 + $0x50] sm:$0xff] }
 0x15d   : > { %998 = vmatpush1.msra.mxu0 %v905_v61  ;;  %1159 = vmatpush1.msra.mxu1 %v907_v60  ;;  %v896_v5 = vsel %vm768_vm14, %v3815_v14, %v3823_v53  ;;  %v893_v29 = vsel %vm765_vm15, %v3816_v37, %v3824_v20  ;;  %v895_v4 = vsel %vm767_vm0, %v3817_v52, %v3825_v45  ;;  %v965_v22 = vld [vmem:[#allocation3 + $0x40] sm:$0xff]  ;;  %v966_v38 = vld [vmem:[#allocation3 + $0x48] sm:$0xff]  ;;  %v968_v19 = vld [vmem:[#allocation3 + $0x58] sm:$0xff] }
 0x15e   : > { %999 = vmatprep.subr.mxu0 %v902_v10  ;;  %1160 = vmatprep.subr.mxu1 %v904_v57  ;;  %v969_v24 = vld [vmem:[#allocation3 + $0x60] sm:$0xff]  ;;  %v970_v46 = vld [vmem:[#allocation3 + $0x68] sm:$0xff]  ;;  %v971_v63 = vld [vmem:[#allocation3 + $0x70] sm:$0xff] }
 0x15f   : > { %1000 = vmatpush1.msra.mxu0 %v901_v17  ;;  %1161 = vmatpush1.msra.mxu1 %v903_v48  ;;  %v972_v0 = vld [vmem:[#allocation3 + $0x78] sm:$0xff] }
 0x160   : > { %1001 = vmatprep.subr.mxu0 %v898_v3  ;;  %1162 = vmatprep.subr.mxu1 %v900_v25 }
 0x161   : > { %1002 = vmatpush1.msra.mxu0 %v897_v6  ;;  %1163 = vmatpush1.msra.mxu1 %v899_v12 }
 0x162   : > { %1003 = vmatprep.subr.mxu0 %v894_v33  ;;  %1164 = vmatprep.subr.mxu1 %v896_v5 }
 0x163   : > { %1004 = vmatpush1.msra.mxu0 %v893_v29  ;;  %1165 = vmatpush1.msra.mxu1 %v895_v4 }
 0x164   : > { %1038 = vmatmul.mubr.f32.vlgmr.msra.gmra.mxu0 %v957_v51  ;;  %1199 = vmatmul.mubr.f32.vlgmr.msra.gmra.mxu1 %v957_v51 }
 0x165   : > { %1043 = vmatprep.mubr.f32.mxu0 %v3826_v42  ;;  %1204 = vmatprep.mubr.f32.mxu1 %v3826_v42 }
 0x168   : > { %1044 = vmatmul.mubr.f32.gmra.mxu0 %v958_v16  ;;  %1205 = vmatmul.mubr.f32.gmra.mxu1 %v958_v16 }
 0x169   : > { %1049 = vmatprep.mubr.f32.mxu0 %v3826_v42  ;;  %1210 = vmatprep.mubr.f32.mxu1 %v3826_v42 }
 0x16c   : > { %1050 = vmatmul.mubr.f32.gmra.mxu0 %v959_v8  ;;  %1211 = vmatmul.mubr.f32.gmra.mxu1 %v959_v8 }
 0x16d   : > { %1055 = vmatprep.mubr.f32.mxu0 %v3826_v42  ;;  %1216 = vmatprep.mubr.f32.mxu1 %v3826_v42 }
 0x170   : > { %1056 = vmatmul.mubr.f32.gmra.mxu0 %v960_v28  ;;  %1217 = vmatmul.mubr.f32.gmra.mxu1 %v960_v28 }
 0x171   : > { %1061 = vmatprep.mubr.f32.mxu0 %v3826_v42  ;;  %1222 = vmatprep.mubr.f32.mxu1 %v3826_v42 }
 0x174   : > { %1062 = vmatmul.mubr.f32.gmra.mxu0 %v961_v56  ;;  %1223 = vmatmul.mubr.f32.gmra.mxu1 %v961_v56 }
 0x175   : > { %1067 = vmatprep.mubr.f32.mxu0 %v3826_v42  ;;  %1228 = vmatprep.mubr.f32.mxu1 %v3826_v42 }
 0x178   : > { %1068 = vmatmul.mubr.f32.gmra.mxu0 %v962_v15  ;;  %1229 = vmatmul.mubr.f32.gmra.mxu1 %v962_v15 }
 0x179   : > { %1073 = vmatprep.mubr.f32.mxu0 %v3826_v42  ;;  %1234 = vmatprep.mubr.f32.mxu1 %v3826_v42 }
 0x17c   : > { %1074 = vmatmul.mubr.f32.gmra.mxu0 %v963_v39  ;;  %1235 = vmatmul.mubr.f32.gmra.mxu1 %v963_v39 }
 0x17d   : > { %1079 = vmatprep.mubr.f32.mxu0 %v3826_v42  ;;  %1240 = vmatprep.mubr.f32.mxu1 %v3826_v42 }
 0x180   : > { %1080 = vmatmul.mubr.f32.gmra.mxu0 %v964_v49  ;;  %1241 = vmatmul.mubr.f32.gmra.mxu1 %v964_v49 }
 0x181   : > { %1085 = vmatprep.mubr.f32.mxu0 %v3826_v42  ;;  %1246 = vmatprep.mubr.f32.mxu1 %v3826_v42 }
 0x184   : > { %1086 = vmatmul.mubr.f32.gmra.mxu0 %v965_v22  ;;  %1247 = vmatmul.mubr.f32.gmra.mxu1 %v965_v22 }
 0x185   : > { %1091 = vmatprep.mubr.f32.mxu0 %v3826_v42  ;;  %1252 = vmatprep.mubr.f32.mxu1 %v3826_v42 }
 0x188   : > { %1092 = vmatmul.mubr.f32.gmra.mxu0 %v966_v38  ;;  %1253 = vmatmul.mubr.f32.gmra.mxu1 %v966_v38 }
 0x189   : > { %1097 = vmatprep.mubr.f32.mxu0 %v3826_v42  ;;  %1258 = vmatprep.mubr.f32.mxu1 %v3826_v42 }
 0x18c   : > { %1098 = vmatmul.mubr.f32.gmra.mxu0 %v967_v40  ;;  %1259 = vmatmul.mubr.f32.gmra.mxu1 %v967_v40 }
 0x18d   : > { %1103 = vmatprep.mubr.f32.mxu0 %v3826_v42  ;;  %1264 = vmatprep.mubr.f32.mxu1 %v3826_v42 }
 0x190   : > { %1104 = vmatmul.mubr.f32.gmra.mxu0 %v968_v19  ;;  %1265 = vmatmul.mubr.f32.gmra.mxu1 %v968_v19 }
 0x191   : > { %1109 = vmatprep.mubr.f32.mxu0 %v3826_v42  ;;  %1270 = vmatprep.mubr.f32.mxu1 %v3826_v42 }
 0x194   : > { %1110 = vmatmul.mubr.f32.gmra.mxu0 %v969_v24  ;;  %1271 = vmatmul.mubr.f32.gmra.mxu1 %v969_v24 }
 0x195   : > { %1115 = vmatprep.mubr.f32.mxu0 %v3826_v42  ;;  %1276 = vmatprep.mubr.f32.mxu1 %v3826_v42 }
 0x198   : > { %1116 = vmatmul.mubr.f32.gmra.mxu0 %v970_v46  ;;  %1277 = vmatmul.mubr.f32.gmra.mxu1 %v970_v46 }
 0x199   : > { %1121 = vmatprep.mubr.f32.mxu0 %v3826_v42  ;;  %1282 = vmatprep.mubr.f32.mxu1 %v3826_v42 }
 0x19c   : > { %1122 = vmatmul.mubr.f32.gmra.mxu0 %v971_v63  ;;  %1283 = vmatmul.mubr.f32.gmra.mxu1 %v971_v63 }
 0x19d   : > { %1127 = vmatprep.mubr.f32.mxu0 %v3826_v42  ;;  %1288 = vmatprep.mubr.f32.mxu1 %v3826_v42 }
 0x1a0   : > { %1128 = vmatmul.mubr.f32.gmra.mxu0 %v972_v0  ;;  %1289 = vmatmul.mubr.f32.gmra.mxu1 %v972_v0 }
 0x1a1   : > { %1552 = vmatprep.mubr.f32.mxu0 %v3826_v42  ;;  %1623 = vmatprep.mubr.f32.mxu1 %v3826_v42 }
 0x224   : > { %v2955_v32 = vpop.f32.mrf.mxu0  ;;  %v2957_v47 = vpop.f32.mrf.mxu1 }
 0x225   : > { %3827 = vst [vmem:[#allocation77_spill] sm:$0xff] %v2955_v32  ;;  %3828 = vst [vmem:[#allocation78_spill] sm:$0xff] %v2957_v47  ;;  %v3040_v5 = vmul.f32 0.01, %v2955_v32  ;;  %v3047_v29 = vmul.f32 0.01, %v2957_v47 }
 0x226   : > { %v2959_v9 = vpop.f32.mrf.mxu0  ;;  %v2961_v11 = vpop.f32.mrf.mxu1 }
 0x227   : > { %3829 = vst [vmem:[#allocation63_spill] sm:$0xff] %v2959_v9  ;;  %3830 = vst [vmem:[#allocation66_spill] sm:$0xff] %v2961_v11  ;;  %v3050_v45 = vmul.f32 0.01, %v2959_v9  ;;  %v3053_v4 = vmul.f32 0.01, %v2961_v11 }
 0x228   : > { %v2963_v18 = vpop.f32.mrf.mxu0  ;;  %v2965_v55 = vpop.f32.mrf.mxu1  ;;  %3858 = vst [vmem:[#allocation61_spill] sm:$0xff] %v3040_v5  ;;  %3859 = vst [vmem:[#allocation57_spill] sm:$0xff] %v3047_v29 }
 0x229   : > { %3831 = vst [vmem:[#allocation59_spill] sm:$0xff] %v2963_v18  ;;  %3832 = vst [vmem:[#allocation62_spill] sm:$0xff] %v2965_v55  ;;  %v3056_v42 = vmul.f32 0.01, %v2963_v18  ;;  %v3059_v16 = vmul.f32 0.01, %v2965_v55 }
 0x22a   : > { %v2967_v31 = vpop.f32.mrf.mxu0  ;;  %v2969_v1 = vpop.f32.mrf.mxu1  ;;  %3860 = vst [vmem:[#allocation58_spill] sm:$0xff] %v3050_v45  ;;  %3861 = vst [vmem:[#allocation31_spill] sm:$0xff] %v3053_v4 }
 0x22b   : > { %3833 = vst [vmem:[#allocation75_spill] sm:$0xff] %v2967_v31  ;;  %3834 = vst [vmem:[#allocation76_spill] sm:$0xff] %v2969_v1  ;;  %v3062_v8 = vmul.f32 0.01, %v2967_v31  ;;  %v3069_v15 = vmul.f32 0.01, %v2969_v1 }
 0x22c   : > { %v2971_v62 = vpop.f32.mrf.mxu0  ;;  %v2973_v34 = vpop.f32.mrf.mxu1  ;;  %3862 = vst [vmem:[#allocation34_spill] sm:$0xff] %v3056_v42  ;;  %3863 = vst [vmem:[#allocation27_spill] sm:$0xff] %v3059_v16 }
 0x22d   : > { %3835 = vst [vmem:[#allocation73_spill] sm:$0xff] %v2971_v62  ;;  %3836 = vst [vmem:[#allocation74_spill] sm:$0xff] %v2973_v34  ;;  %v3072_v39 = vmul.f32 0.01, %v2971_v62  ;;  %v3075_v49 = vmul.f32 0.01, %v2973_v34 }
 0x22e   : > { %v2975_v59 = vpop.f32.mrf.mxu0  ;;  %v2977_v44 = vpop.f32.mrf.mxu1  ;;  %3864 = vst [vmem:[#allocation30_spill] sm:$0xff] %v3062_v8  ;;  %3865 = vst [vmem:[#allocation53_spill] sm:$0xff] %v3069_v15 }
 0x22f   : > { %3837 = vst [vmem:[#allocation54_spill] sm:$0xff] %v2975_v59  ;;  %3838 = vst [vmem:[#allocation55_spill] sm:$0xff] %v2977_v44  ;;  %v3078_v22 = vmul.f32 0.01, %v2975_v59  ;;  %v3081_v38 = vmul.f32 0.01, %v2977_v44 }
 0x230   : > { %v2979_v61 = vpop.f32.mrf.mxu0  ;;  %v2981_v2 = vpop.f32.mrf.mxu1  ;;  %3866 = vst [vmem:[#allocation56_spill] sm:$0xff] %v3072_v39  ;;  %3867 = vst [vmem:[#allocation49_spill] sm:$0xff] %v3075_v49 }
 0x231   : > { %3839 = vst [vmem:[#allocation50_spill] sm:$0xff] %v2979_v61  ;;  %3840 = vst [vmem:[#allocation51_spill] sm:$0xff] %v2981_v2  ;;  %v3084_v40 = vmul.f32 0.01, %v2979_v61  ;;  %v3091_v46 = vmul.f32 0.01, %v2981_v2 }
 0x232   : > { %v2983_v60 = vpop.f32.mrf.mxu0  ;;  %v2985_v26 = vpop.f32.mrf.mxu1  ;;  %3868 = vst [vmem:[#allocation52_spill] sm:$0xff] %v3078_v22  ;;  %3869 = vst [vmem:[#allocation22_spill] sm:$0xff] %v3081_v38 }
 0x233   : > { %3841 = vst [vmem:[#allocation71_spill] sm:$0xff] %v2983_v60  ;;  %3842 = vst [vmem:[#allocation72_spill] sm:$0xff] %v2985_v26  ;;  %v3094_v63 = vmul.f32 0.01, %v2983_v60  ;;  %v3097_v0 = vmul.f32 0.01, %v2985_v26 }
 0x234   : > { %v2987_v54 = vpop.f32.mrf.mxu0  ;;  %v2989_v35 = vpop.f32.mrf.mxu1  ;;  %3870 = vst [vmem:[#allocation23_spill] sm:$0xff] %v3084_v40  ;;  %3871 = vst [vmem:[#allocation18_spill] sm:$0xff] %v3091_v46 }
 0x235   : > { %3843 = vst [vmem:[#allocation69_spill] sm:$0xff] %v2987_v54  ;;  %3844 = vst [vmem:[#allocation70_spill] sm:$0xff] %v2989_v35  ;;  %v3100_v29 = vmul.f32 0.01, %v2987_v54  ;;  %v3103_v5 = vmul.f32 0.01, %v2989_v35 }
 0x236   : > { %v2991_v21 = vpop.f32.mrf.mxu0  ;;  %v2993_v7 = vpop.f32.mrf.mxu1  ;;  %3872 = vst [vmem:[#allocation19_spill] sm:$0xff] %v3094_v63  ;;  %3873 = vst [vmem:[#allocation45_spill] sm:$0xff] %v3097_v0 }
 0x237   : > { %3845 = vst [vmem:[#allocation46_spill] sm:$0xff] %v2991_v21  ;;  %3846 = vst [vmem:[#allocation47_spill] sm:$0xff] %v2993_v7  ;;  %v3106_v4 = vmul.f32 0.01, %v2991_v21  ;;  %v3113_v42 = vmul.f32 0.01, %v2993_v7 }
 0x238   : > { %v2995_v10 = vpop.f32.mrf.mxu0  ;;  %v2997_v41 = vpop.f32.mrf.mxu1  ;;  %3874 = vst [vmem:[#allocation48_spill] sm:$0xff] %v3100_v29  ;;  %3875 = vst [vmem:[#allocation40_spill] sm:$0xff] %v3103_v5 }
 0x239   : > { %3847 = vst [vmem:[#allocation42_spill] sm:$0xff] %v2995_v10  ;;  %3848 = vst [vmem:[#allocation43_spill] sm:$0xff] %v2997_v41  ;;  %v3116_v15 = vmul.f32 0.01, %v2995_v10  ;;  %v3119_v8 = vmul.f32 0.01, %v2997_v41 }
 0x23a   : > { %v2999_v57 = vpop.f32.mrf.mxu0  ;;  %v3001_v36 = vpop.f32.mrf.mxu1  ;;  %3876 = vst [vmem:[#allocation44_spill] sm:$0xff] %v3106_v4  ;;  %3877 = vst [vmem:[#allocation15_spill] sm:$0xff] %v3113_v42 }
 0x23b   : > { %3849 = vst [vmem:[#allocation67_spill] sm:$0xff] %v2999_v57  ;;  %3850 = vst [vmem:[#allocation68_spill] sm:$0xff] %v3001_v36  ;;  %v3122_v47 = vmul.f32 0.01, %v2999_v57  ;;  %v3125_v32 = vmul.f32 0.01, %v3001_v36 }
 0x23c   : > { %v3003_v17 = vpop.f32.mrf.mxu0  ;;  %v3005_v27 = vpop.f32.mrf.mxu1  ;;  %3878 = vst [vmem:[#allocation16_spill] sm:$0xff] %v3116_v15  ;;  %3879 = vst [vmem:[#allocation13_spill] sm:$0xff] %v3119_v8 }
 0x23d   : > { %3851 = vst [vmem:[#allocation64_spill] sm:$0xff] %v3003_v17  ;;  %3852 = vst [vmem:[#allocation65_spill] sm:$0xff] %v3005_v27  ;;  %v3128_v49 = vmul.f32 0.01, %v3003_v17  ;;  %v3135_v9 = vmul.f32 0.01, %v3005_v27 }
 0x23e   : > { %v3007_v48 = vpop.f32.mrf.mxu0  ;;  %v3009_v30 = vpop.f32.mrf.mxu1  ;;  %3880 = vst [vmem:[#allocation14_spill] sm:$0xff] %v3122_v47  ;;  %3881 = vst [vmem:[#allocation36_spill] sm:$0xff] %v3125_v32 }
 0x23f   : > { %3853 = vst [vmem:[#allocation39_spill] sm:$0xff] %v3007_v48  ;;  %3854 = vst [vmem:[#allocation41_spill] sm:$0xff] %v3009_v30  ;;  %v3138_v38 = vmul.f32 0.01, %v3007_v48  ;;  %v3141_v22 = vmul.f32 0.01, %v3009_v30 }
 0x240   : > { %v3011_v14 = vpop.f32.mrf.mxu0  ;;  %v3013_v37 = vpop.f32.mrf.mxu1  ;;  %3882 = vst [vmem:[#allocation37_spill] sm:$0xff] %v3128_v49  ;;  %3883 = vst [vmem:[#allocation32_spill] sm:$0xff] %v3135_v9 }
 0x241   : > { %3855 = vst [vmem:[#allocation35_spill] sm:$0xff] %v3011_v14  ;;  %3856 = vst [vmem:[#allocation38_spill] sm:$0xff] %v3013_v37  ;;  %v3144_v55 = vmul.f32 0.01, %v3011_v14  ;;  %v3147_v18 = vmul.f32 0.01, %v3013_v37 }
 0x242   : > { %v3015_v52 = vpop.f32.mrf.mxu0  ;;  %v3017_v58 = vpop.f32.mrf.mxu1  ;;  %3884 = vst [vmem:[#allocation33_spill] sm:$0xff] %v3138_v38  ;;  %3885 = vst [vmem:[#allocation11_spill] sm:$0xff] %v3141_v22 }
 0x243   : > { %3857 = vst [vmem:[#allocation60_spill] sm:$0xff] %v3017_v58  ;;  %3886 = vst [vmem:[#allocation12_spill] sm:$0xff] %v3144_v55  ;;  %v3150_v46 = vmul.f32 0.01, %v3015_v52  ;;  %v3157_v31 = vmul.f32 0.01, %v3017_v58 }
 0x244   : > { %v3019_v3 = vpop.f32.mrf.mxu0  ;;  %v3021_v23 = vpop.f32.mrf.mxu1  ;;  %3887 = vst [vmem:[#allocation9_spill] sm:$0xff] %v3147_v18 }
 0x245   : > { %3888 = vst [vmem:[#allocation10_spill] sm:$0xff] %v3150_v46  ;;  %3889 = vst [vmem:[#allocation28_spill] sm:$0xff] %v3157_v31  ;;  %v3160_v0 = vmul.f32 0.01, %v3019_v3  ;;  %v3163_v63 = vmul.f32 0.01, %v3021_v23 }
 0x246   : > { %v3023_v25 = vpop.f32.mrf.mxu0  ;;  %v3025_v50 = vpop.f32.mrf.mxu1 }
 0x247   : > { %3890 = vst [vmem:[#allocation29_spill] sm:$0xff] %v3160_v0  ;;  %3891 = vst [vmem:[#allocation25_spill] sm:$0xff] %v3163_v63  ;;  %v3166_v34 = vmul.f32 0.01, %v3023_v25  ;;  %v3169_v62 = vmul.f32 0.01, %v3025_v50 }
 0x248   : > { %v3027_v6 = vpop.f32.mrf.mxu0  ;;  %v3029_v13 = vpop.f32.mrf.mxu1 }
 0x249   : > { %3892 = vst [vmem:[#allocation26_spill] sm:$0xff] %v3166_v34  ;;  %3893 = vst [vmem:[#allocation21_spill] sm:$0xff] %v3169_v62  ;;  %v3172_v5 = vmul.f32 0.01, %v3027_v6  ;;  %v3179_v59 = vmul.f32 0.01, %v3029_v13 }
 0x24a   : > { %v3031_v12 = vpop.f32.mrf.mxu0  ;;  %v3033_v43 = vpop.f32.mrf.mxu1 }
 0x24b   : > { %3894 = vst [vmem:[#allocation24_spill] sm:$0xff] %v3172_v5  ;;  %3895 = vst [vmem:[#allocation17_spill] sm:$0xff] %v3179_v59  ;;  %v3182_v42 = vmul.f32 0.01, %v3031_v12  ;;  %v3185_v4 = vmul.f32 0.01, %v3033_v43 }
 0x24c   : > { %v3035_v33 = vpop.f32.mrf.mxu0  ;;  %v3037_v53 = vpop.f32.mrf.mxu1 }
 0x24d   : > { %v3188_v2 = vmul.f32 0.01, %v3035_v33  ;;  %v3191_v61 = vmul.f32 0.01, %v3037_v53 }
 0x24e   : > { %v3042_v51 = vpop.f32.mrf.mxu0  ;;  %v3044_v20 = vpop.f32.mrf.mxu1 }
 0x24f   : > { %v3194_v8 = vmul.f32 0.01, %v3042_v51  ;;  %v3197_v60 = vmul.f32 0.01, %v3044_v20 }
 0x250   : > { %v3064_v28 = vpop.f32.mrf.mxu0  ;;  %v3066_v56 = vpop.f32.mrf.mxu1 }
 0x251   : > { %v3200_v32 = vmul.f32 0.01, %v3064_v28  ;;  %v3203_v47 = vmul.f32 0.01, %v3066_v56 }
 0x252   : > { %v3086_v19 = vpop.f32.mrf.mxu0  ;;  %v3088_v24 = vpop.f32.mrf.mxu1 }
 0x253   : > { %v3206_v35 = vmul.f32 0.01, %v3086_v19  ;;  %v3209_v54 = vmul.f32 0.01, %v3088_v24 }
 0x254   : > { %v3108_v45 = vpop.f32.mrf.mxu0  ;;  %v3110_v16 = vpop.f32.mrf.mxu1 }
 0x255   : > { %v3212_v9 = vmul.f32 0.01, %v3108_v45  ;;  %v3215_v21 = vmul.f32 0.01, %v3110_v16  ;;  %vm1343_vm15 = vcmp.ge.f32.partialorder %v3108_v45, 0.0  ;;  %vm1345_vm0 = vcmp.ge.f32.partialorder %v3110_v16, 0.0 }
 0x256   : > { %v3130_v39 = vpop.f32.mrf.mxu0  ;;  %v3132_v11 = vpop.f32.mrf.mxu1 }
 0x257   : > { %v3218_v22 = vmul.f32 0.01, %v3130_v39  ;;  %v3221_v38 = vmul.f32 0.01, %v3132_v11  ;;  %vm1344_vm13 = vcmp.ge.f32.partialorder %v3130_v39, 0.0  ;;  %vm1346_vm14 = vcmp.ge.f32.partialorder %v3132_v11, 0.0 }
 0x258   : > { %v3152_v40 = vpop.f32.mrf.mxu0  ;;  %v3154_v1 = vpop.f32.mrf.mxu1 }
 0x259   : > { %v1411_v41 = vmul.f32 0.01, %v3152_v40  ;;  %v1413_v10 = vmul.f32 0.01, %v3154_v1  ;;  %vm1347_vm11 = vcmp.ge.f32.partialorder %v3152_v40, 0.0  ;;  %vm1349_vm12 = vcmp.ge.f32.partialorder %v3154_v1, 0.0 }
 0x25a   : > { %v3174_v29 = vpop.f32.mrf.mxu0  ;;  %v3176_v44 = vpop.f32.mrf.mxu1 }
 0x25b   : > { %v1412_v18 = vmul.f32 0.01, %v3174_v29  ;;  %v1414_v57 = vmul.f32 0.01, %v3176_v44  ;;  %vm1348_vm9 = vcmp.ge.f32.partialorder %v3174_v29, 0.0  ;;  %vm1350_vm10 = vcmp.ge.f32.partialorder %v3176_v44, 0.0 }
 0x25c   : > { %v1123_v15 = vpop.f32.mrf.mxu0  ;;  %v1284_v26 = vpop.f32.mrf.mxu1 }
 0x25d   : > { %v1415_v62 = vmul.f32 0.01, %v1123_v15  ;;  %v1417_v34 = vmul.f32 0.01, %v1284_v26  ;;  %vm1351_vm7 = vcmp.ge.f32.partialorder %v1123_v15, 0.0  ;;  %vm1353_vm8 = vcmp.ge.f32.partialorder %v1284_v26, 0.0 }
 0x25e   : > { %v1125_v49 = vpop.f32.mrf.mxu0  ;;  %v1286_v7 = vpop.f32.mrf.mxu1 }
 0x25f   : > { %v1416_v31 = vmul.f32 0.01, %v1125_v49  ;;  %v1418_v46 = vmul.f32 0.01, %v1286_v7  ;;  %vm1352_vm5 = vcmp.ge.f32.partialorder %v1125_v49, 0.0  ;;  %vm1354_vm6 = vcmp.ge.f32.partialorder %v1286_v7, 0.0 }
 0x260   : > { %v1129_v55 = vpop.f32.mrf.mxu0  ;;  %v1290_v36 = vpop.f32.mrf.mxu1 }
 0x261   : > { %vm1355_vm1 = vcmp.ge.f32.partialorder %v1129_v55, 0.0  ;;  %v1419_v27 = vmul.f32 0.01, %v1129_v55  ;;  %vm1357_vm2 = vcmp.ge.f32.partialorder %v1290_v36, 0.0  ;;  %v1421_v17 = vmul.f32 0.01, %v1290_v36 }
 0x262   : > { %v1131_v63 = vpop.f32.mrf.mxu0  ;;  %v1292_v0 = vpop.f32.mrf.mxu1  ;;  %v1480_v58 = vsel %vm1352_vm5, %v1125_v49, %v1416_v31  ;;  %v1476_v31 = vsel %vm1348_vm9, %v3174_v29, %v1412_v18  ;;  %v1472_v18 = vsel %vm1344_vm13, %v3130_v39, %v3218_v22  ;;  %vm1336_vm5 = vcmp.ge.f32.partialorder %v3042_v51, 0.0  ;;  %v3910_v29 = vld [vmem:[#allocation28_spill] sm:$0xff]  ;;  %v3918_v39 = vld [vmem:[#allocation11_spill] sm:$0xff]  ;;  %v3919_v22 = vld [vmem:[#allocation46_spill] sm:$0xff] }
 0x263   : > { %vm1356_vm3 = vcmp.ge.f32.partialorder %v1131_v63, 0.0  ;;  %v1420_v30 = vmul.f32 0.01, %v1131_v63  ;;  %vm1358_vm4 = vcmp.ge.f32.partialorder %v1292_v0, 0.0  ;;  %v1422_v48 = vmul.f32 0.01, %v1292_v0 }
 0x264   : > { %v1483_v59 = vsel %vm1355_vm1, %v1129_v55, %v1419_v27  ;;  %v1485_v5 = vsel %vm1357_vm2, %v1290_v36, %v1421_v17  ;;  %v1479_v55 = vsel %vm1351_vm7, %v1123_v15, %v1415_v62  ;;  %v1481_v36 = vsel %vm1353_vm8, %v1284_v26, %v1417_v34  ;;  %v3899_v27 = vld [vmem:[#allocation35_spill] sm:$0xff] }
 0x265   : > { %v1484_v37 = vsel %vm1356_vm3, %v1131_v63, %v1420_v30  ;;  %v1486_v14 = vsel %vm1358_vm4, %v1292_v0, %v1422_v48  ;;  %v1482_v48 = vsel %vm1354_vm6, %v1286_v7, %v1418_v46  ;;  %vm1340_vm1 = vcmp.ge.f32.partialorder %v3086_v19, 0.0  ;;  %v3900_v30 = vld [vmem:[#allocation38_spill] sm:$0xff]  ;;  %v3923_v63 = vld [vmem:[#allocation69_spill] sm:$0xff] }
 0x266   : > { %1488 = vmatprep.subr.mxu0 %v1484_v37  ;;  %1559 = vmatprep.subr.mxu1 %v1486_v14  ;;  %vm1342_vm2 = vcmp.ge.f32.partialorder %v3088_v24, 0.0  ;;  %v1475_v62 = vsel %vm1347_vm11, %v3152_v40, %v1411_v41  ;;  %v1477_v34 = vsel %vm1349_vm12, %v3154_v1, %v1413_v10  ;;  %vm1339_vm3 = vcmp.ge.f32.partialorder %v3064_v28, 0.0  ;;  %v3896_v10 = vld [vmem:[#allocation60_spill] sm:$0xff]  ;;  %v3901_v14 = vld [vmem:[#allocation26_spill] sm:$0xff]  ;;  %v3921_v40 = vld [vmem:[#allocation37_spill] sm:$0xff] }
 0x267   : > { %1489 = vmatpush1.msra.mxu0 %v1483_v59  ;;  %1560 = vmatpush1.msra.mxu1 %v1485_v5  ;;  %v1478_v59 = vsel %vm1350_vm10, %v3176_v44, %v1414_v57  ;;  %vm1341_vm4 = vcmp.ge.f32.partialorder %v3066_v56, 0.0  ;;  %v1474_v44 = vsel %vm1346_vm14, %v3132_v11, %v3221_v38  ;;  %vm1338_vm6 = vcmp.ge.f32.partialorder %v3044_v20, 0.0  ;;  %v3898_v57 = vld [vmem:[#allocation17_spill] sm:$0xff]  ;;  %v3907_v5 = vld [vmem:[#allocation64_spill] sm:$0xff]  ;;  %v3920_v38 = vld [vmem:[#allocation47_spill] sm:$0xff] }
 0x268   : > { %1490 = vmatprep.subr.mxu0 %v1480_v58  ;;  %1561 = vmatprep.subr.mxu1 %v1482_v48  ;;  %v1471_v1 = vsel %vm1343_vm15, %v3108_v45, %v3212_v9  ;;  %v1473_v26 = vsel %vm1345_vm0, %v3110_v16, %v3215_v21  ;;  %vm1335_vm7 = vcmp.ge.f32.partialorder %v3035_v33, 0.0  ;;  %vm1337_vm8 = vcmp.ge.f32.partialorder %v3037_v53, 0.0  ;;  %v3902_v58 = vld [vmem:[#allocation21_spill] sm:$0xff]  ;;  %v3911_v45 = vld [vmem:[#allocation67_spill] sm:$0xff]  ;;  %v3924_v0 = vld [vmem:[#allocation70_spill] sm:$0xff] }
 0x269   : > { %1491 = vmatpush1.msra.mxu0 %v1479_v55  ;;  %1562 = vmatpush1.msra.mxu1 %v1481_v36  ;;  %v1468_v11 = vsel %vm1340_vm1, %v3086_v19, %v3206_v35  ;;  %v1470_v9 = vsel %vm1342_vm2, %v3088_v24, %v3209_v54  ;;  %vm1332_vm9 = vcmp.ge.f32.partialorder %v3031_v12, 0.0  ;;  %vm1334_vm10 = vcmp.ge.f32.partialorder %v3033_v43, 0.0  ;;  %v3914_v16 = vld [vmem:[#allocation9_spill] sm:$0xff]  ;;  %v3922_v24 = vld [vmem:[#allocation32_spill] sm:$0xff]  ;;  %v3925_v48 = vld [vmem:[#allocation14_spill] sm:$0xff] }
 0x26a   : > { %1492 = vmatprep.subr.mxu0 %v1476_v31  ;;  %1563 = vmatprep.subr.mxu1 %v1478_v59  ;;  %v1467_v21 = vsel %vm1339_vm3, %v3064_v28, %v3200_v32  ;;  %v1469_v35 = vsel %vm1341_vm4, %v3066_v56, %v3203_v47  ;;  %vm1331_vm11 = vcmp.ge.f32.partialorder %v3027_v6, 0.0  ;;  %vm1333_vm12 = vcmp.ge.f32.partialorder %v3029_v13, 0.0  ;;  %v3916_v28 = vld [vmem:[#allocation43_spill] sm:$0xff]  ;;  %v3917_v56 = vld [vmem:[#allocation33_spill] sm:$0xff]  ;;  %v3926_v36 = vld [vmem:[#allocation36_spill] sm:$0xff] }
 0x26b   : > { %1493 = vmatpush1.msra.mxu0 %v1475_v62  ;;  %1564 = vmatpush1.msra.mxu1 %v1477_v34  ;;  %v1464_v54 = vsel %vm1336_vm5, %v3042_v51, %v3194_v8  ;;  %v1466_v32 = vsel %vm1338_vm6, %v3044_v20, %v3197_v60  ;;  %vm1328_vm13 = vcmp.ge.f32.partialorder %v3023_v25, 0.0  ;;  %vm1330_vm14 = vcmp.ge.f32.partialorder %v3025_v50, 0.0  ;;  %v3908_v51 = vld [vmem:[#allocation65_spill] sm:$0xff]  ;;  %v3915_v8 = vld [vmem:[#allocation42_spill] sm:$0xff]  ;;  %v3927_v59 = vld [vmem:[#allocation71_spill] sm:$0xff] }
 0x26c   : > { %1494 = vmatprep.subr.mxu0 %v1472_v18  ;;  %1565 = vmatprep.subr.mxu1 %v1474_v44  ;;  %v1463_v47 = vsel %vm1335_vm7, %v3035_v33, %v3188_v2  ;;  %v1465_v7 = vsel %vm1337_vm8, %v3037_v53, %v3191_v61  ;;  %vm1327_vm15 = vcmp.ge.f32.partialorder %v3019_v3, 0.0  ;;  %vm1329_vm0 = vcmp.ge.f32.partialorder %v3021_v23, 0.0  ;;  %v3897_v61 = vld [vmem:[#allocation24_spill] sm:$0xff]  ;;  %v3906_v53 = vld [vmem:[#allocation25_spill] sm:$0xff] }
 0x26d   : > { %1495 = vmatpush1.msra.mxu0 %v1471_v1  ;;  %1566 = vmatpush1.msra.mxu1 %v1473_v26  ;;  %v1460_v60 = vsel %vm1332_vm9, %v3031_v12, %v3182_v42  ;;  %v1462_v2 = vsel %vm1334_vm10, %v3033_v43, %v3185_v4  ;;  %vm1324_vm1 = vcmp.ge.f32.partialorder %v3015_v52, 0.0  ;;  %vm1326_vm2 = vcmp.ge.f32.partialorder %v3896_v10, 0.0  ;;  %v3903_v12 = vld [vmem:[#allocation39_spill] sm:$0xff]  ;;  %v3904_v43 = vld [vmem:[#allocation41_spill] sm:$0xff]  ;;  %v3912_v4 = vld [vmem:[#allocation68_spill] sm:$0xff] }
 0x26e   : > { %1496 = vmatprep.subr.mxu0 %v1468_v11  ;;  %1567 = vmatprep.subr.mxu1 %v1470_v9  ;;  %v1459_v41 = vsel %vm1331_vm11, %v3027_v6, %v3897_v61  ;;  %v1461_v17 = vsel %vm1333_vm12, %v3029_v13, %v3898_v57  ;;  %vm1323_vm3 = vcmp.ge.f32.partialorder %v3899_v27, 0.0  ;;  %vm1325_vm4 = vcmp.ge.f32.partialorder %v3900_v30, 0.0  ;;  %v3905_v13 = vld [vmem:[#allocation29_spill] sm:$0xff]  ;;  %v3928_v62 = vld [vmem:[#allocation72_spill] sm:$0xff]  ;;  %v3931_v26 = vld [vmem:[#allocation50_spill] sm:$0xff] }
 0x26f   : > { %1497 = vmatpush1.msra.mxu0 %v1467_v21  ;;  %1568 = vmatpush1.msra.mxu1 %v1469_v35  ;;  %v1456_v37 = vsel %vm1328_vm13, %v3023_v25, %v3901_v14  ;;  %v1458_v6 = vsel %vm1330_vm14, %v3025_v50, %v3902_v58  ;;  %vm1320_vm5 = vcmp.ge.f32.partialorder %v3903_v12, 0.0  ;;  %vm1322_vm6 = vcmp.ge.f32.partialorder %v3904_v43, 0.0  ;;  %v3909_v50 = vld [vmem:[#allocation10_spill] sm:$0xff]  ;;  %v3929_v34 = vld [vmem:[#allocation16_spill] sm:$0xff]  ;;  %v3930_v44 = vld [vmem:[#allocation13_spill] sm:$0xff] }
 0x270   : > { %1498 = vmatprep.subr.mxu0 %v1464_v54  ;;  %1569 = vmatprep.subr.mxu1 %v1466_v32  ;;  %v1455_v33 = vsel %vm1327_vm15, %v3019_v3, %v3905_v13  ;;  %v1457_v25 = vsel %vm1329_vm0, %v3021_v23, %v3906_v53  ;;  %vm1319_vm7 = vcmp.ge.f32.partialorder %v3907_v5, 0.0  ;;  %vm1321_vm8 = vcmp.ge.f32.partialorder %v3908_v51, 0.0  ;;  %v3913_v23 = vld [vmem:[#allocation12_spill] sm:$0xff]  ;;  %v3932_v11 = vld [vmem:[#allocation51_spill] sm:$0xff]  ;;  %v3935_v32 = vld [vmem:[#allocation54_spill] sm:$0xff] }
 0x271   : > { %1499 = vmatpush1.msra.mxu0 %v1463_v47  ;;  %1570 = vmatpush1.msra.mxu1 %v1465_v7  ;;  %v1452_v20 = vsel %vm1324_vm1, %v3015_v52, %v3909_v50  ;;  %v1454_v3 = vsel %vm1326_vm2, %v3896_v10, %v3910_v29  ;;  %vm1316_vm9 = vcmp.ge.f32.partialorder %v3911_v45, 0.0  ;;  %vm1318_vm10 = vcmp.ge.f32.partialorder %v3912_v4, 0.0  ;;  %v3933_v9 = vld [vmem:[#allocation44_spill] sm:$0xff]  ;;  %v3934_v35 = vld [vmem:[#allocation15_spill] sm:$0xff]  ;;  %v3939_v61 = vld [vmem:[#allocation73_spill] sm:$0xff] }
 0x272   : > { %1500 = vmatprep.subr.mxu0 %v1460_v60  ;;  %1571 = vmatprep.subr.mxu1 %v1462_v2  ;;  %v1451_v42 = vsel %vm1323_vm3, %v3899_v27, %v3913_v23  ;;  %v1453_v52 = vsel %vm1325_vm4, %v3900_v30, %v3914_v16  ;;  %vm1315_vm11 = vcmp.ge.f32.partialorder %v3915_v8, 0.0  ;;  %vm1317_vm12 = vcmp.ge.f32.partialorder %v3916_v28, 0.0  ;;  %v3936_v47 = vld [vmem:[#allocation55_spill] sm:$0xff]  ;;  %v3937_v7 = vld [vmem:[#allocation48_spill] sm:$0xff]  ;;  %v3942_v27 = vld [vmem:[#allocation45_spill] sm:$0xff] }
 0x273   : > { %1501 = vmatpush1.msra.mxu0 %v1459_v41  ;;  %1572 = vmatpush1.msra.mxu1 %v1461_v17  ;;  %v1448_v15 = vsel %vm1320_vm5, %v3903_v12, %v3917_v56  ;;  %v1450_v49 = vsel %vm1322_vm6, %v3904_v43, %v3918_v39  ;;  %vm1312_vm13 = vcmp.ge.f32.partialorder %v3919_v22, 0.0  ;;  %vm1314_vm14 = vcmp.ge.f32.partialorder %v3920_v38, 0.0  ;;  %v3938_v2 = vld [vmem:[#allocation40_spill] sm:$0xff]  ;;  %v3940_v41 = vld [vmem:[#allocation74_spill] sm:$0xff]  ;;  %v3941_v57 = vld [vmem:[#allocation19_spill] sm:$0xff] }
 0x274   : > { %1502 = vmatprep.subr.mxu0 %v1456_v37  ;;  %1573 = vmatprep.subr.mxu1 %v1458_v6  ;;  %v1447_v19 = vsel %vm1319_vm7, %v3907_v5, %v3921_v40  ;;  %v1449_v46 = vsel %vm1321_vm8, %v3908_v51, %v3922_v24  ;;  %vm1311_vm15 = vcmp.ge.f32.partialorder %v3923_v63, 0.0  ;;  %vm1313_vm0 = vcmp.ge.f32.partialorder %v3924_v0, 0.0  ;;  %v3943_v14 = vld [vmem:[#allocation75_spill] sm:$0xff]  ;;  %v3944_v37 = vld [vmem:[#allocation76_spill] sm:$0xff]  ;;  %v3946_v12 = vld [vmem:[#allocation18_spill] sm:$0xff] }
 0x275   : > { %1503 = vmatpush1.msra.mxu0 %v1455_v33  ;;  %1574 = vmatpush1.msra.mxu1 %v1457_v25  ;;  %v1444_v55 = vsel %vm1316_vm9, %v3911_v45, %v3925_v48  ;;  %v1446_v31 = vsel %vm1318_vm10, %v3912_v4, %v3926_v36  ;;  %vm1308_vm1 = vcmp.ge.f32.partialorder %v3927_v59, 0.0  ;;  %vm1310_vm2 = vcmp.ge.f32.partialorder %v3928_v62, 0.0  ;;  %v3945_v58 = vld [vmem:[#allocation23_spill] sm:$0xff]  ;;  %v3948_v33 = vld [vmem:[#allocation62_spill] sm:$0xff]  ;;  %v3949_v53 = vld [vmem:[#allocation52_spill] sm:$0xff] }
 0x276   : > { %1504 = vmatprep.subr.mxu0 %v1452_v20  ;;  %1575 = vmatprep.subr.mxu1 %v1454_v3  ;;  %v1443_v18 = vsel %vm1315_vm11, %v3915_v8, %v3929_v34  ;;  %v1445_v1 = vsel %vm1317_vm12, %v3916_v28, %v3930_v44  ;;  %vm1307_vm3 = vcmp.ge.f32.partialorder %v3931_v26, 0.0  ;;  %vm1309_vm4 = vcmp.ge.f32.partialorder %v3932_v11, 0.0  ;;  %v3947_v13 = vld [vmem:[#allocation59_spill] sm:$0xff]  ;;  %v3950_v5 = vld [vmem:[#allocation22_spill] sm:$0xff]  ;;  %v3953_v29 = vld [vmem:[#allocation56_spill] sm:$0xff] }
 0x277   : > { %1505 = vmatpush1.msra.mxu0 %v1451_v42  ;;  %1576 = vmatpush1.msra.mxu1 %v1453_v52  ;;  %v1440_v21 = vsel %vm1312_vm13, %v3919_v22, %v3933_v9  ;;  %v1442_v54 = vsel %vm1314_vm14, %v3920_v38, %v3934_v35  ;;  %vm1304_vm5 = vcmp.ge.f32.partialorder %v3935_v32, 0.0  ;;  %vm1306_vm6 = vcmp.ge.f32.partialorder %v3936_v47, 0.0  ;;  %v3951_v50 = vld [vmem:[#allocation63_spill] sm:$0xff]  ;;  %v3952_v20 = vld [vmem:[#allocation66_spill] sm:$0xff]  ;;  %v3954_v45 = vld [vmem:[#allocation49_spill] sm:$0xff] }
 0x278   : > { %1506 = vmatprep.subr.mxu0 %v1448_v15  ;;  %1577 = vmatprep.subr.mxu1 %v1450_v49  ;;  %v1439_v60 = vsel %vm1311_vm15, %v3923_v63, %v3937_v7  ;;  %v1441_v10 = vsel %vm1313_vm0, %v3924_v0, %v3938_v2  ;;  %vm1303_vm7 = vcmp.ge.f32.partialorder %v3939_v61, 0.0  ;;  %vm1305_vm8 = vcmp.ge.f32.partialorder %v3940_v41, 0.0  ;;  %v3955_v23 = vld [vmem:[#allocation77_spill] sm:$0xff]  ;;  %v3956_v42 = vld [vmem:[#allocation78_spill] sm:$0xff]  ;;  %v3960_v39 = vld [vmem:[#allocation27_spill] sm:$0xff] }
 0x279   : > { %1507 = vmatpush1.msra.mxu0 %v1447_v19  ;;  %1578 = vmatpush1.msra.mxu1 %v1449_v46  ;;  %v1436_v17 = vsel %vm1308_vm1, %v3927_v59, %v3941_v57  ;;  %v1438_v30 = vsel %vm1310_vm2, %v3928_v62, %v3942_v27  ;;  %vm1300_vm9 = vcmp.ge.f32.partialorder %v3943_v14, 0.0  ;;  %vm1302_vm10 = vcmp.ge.f32.partialorder %v3944_v37, 0.0  ;;  %v3957_v16 = vld [vmem:[#allocation30_spill] sm:$0xff]  ;;  %v3958_v8 = vld [vmem:[#allocation53_spill] sm:$0xff]  ;;  %v3962_v40 = vld [vmem:[#allocation31_spill] sm:$0xff] }
 0x27a   : > { %1508 = vmatprep.subr.mxu0 %v1444_v55  ;;  %1579 = vmatprep.subr.mxu1 %v1446_v31  ;;  %v1435_v6 = vsel %vm1307_vm3, %v3931_v26, %v3945_v58  ;;  %v1437_v43 = vsel %vm1309_vm4, %v3932_v11, %v3946_v12  ;;  %vm1299_vm11 = vcmp.ge.f32.partialorder %v3947_v13, 0.0  ;;  %vm1301_vm12 = vcmp.ge.f32.partialorder %v3948_v33, 0.0  ;;  %v3959_v56 = vld [vmem:[#allocation34_spill] sm:$0xff]  ;;  %v1487_v24 = vld [vmem:[%s3551_s4] sm:$0xff]  ;;  %v3963_v46 = vld [vmem:[#allocation61_spill] sm:$0xff] }
 0x27b   : > { %1509 = vmatpush1.msra.mxu0 %v1443_v18  ;;  %1580 = vmatpush1.msra.mxu1 %v1445_v1  ;;  %v1432_v25 = vsel %vm1304_vm5, %v3935_v32, %v3949_v53  ;;  %v1434_v51 = vsel %vm1306_vm6, %v3936_v47, %v3950_v5  ;;  %vm1296_vm13 = vcmp.ge.f32.partialorder %v3951_v50, 0.0  ;;  %vm1298_vm14 = vcmp.ge.f32.partialorder %v3952_v20, 0.0  ;;  %v3961_v22 = vld [vmem:[#allocation58_spill] sm:$0xff]  ;;  %v3964_v0 = vld [vmem:[#allocation57_spill] sm:$0xff] }
 0x27c   : > { %1510 = vmatprep.subr.mxu0 %v1440_v21  ;;  %1581 = vmatprep.subr.mxu1 %v1442_v54  ;;  %v1431_v3 = vsel %vm1303_vm7, %v3939_v61, %v3953_v29  ;;  %v1433_v4 = vsel %vm1305_vm8, %v3940_v41, %v3954_v45  ;;  %vm1295_vm15 = vcmp.ge.f32.partialorder %v3955_v23, 0.0  ;;  %vm1297_vm0 = vcmp.ge.f32.partialorder %v3956_v42, 0.0 }
 0x27d   : > { %1511 = vmatpush1.msra.mxu0 %v1439_v60  ;;  %1582 = vmatpush1.msra.mxu1 %v1441_v10  ;;  %v1428_v52 = vsel %vm1300_vm9, %v3943_v14, %v3957_v16  ;;  %v1430_v28 = vsel %vm1302_vm10, %v3944_v37, %v3958_v8  ;;  %v1427_v15 = vsel %vm1299_vm11, %v3947_v13, %v3959_v56  ;;  %v1976_v55 = vmov 1966171168  }
 0x27e   : > { %1512 = vmatprep.subr.mxu0 %v1436_v17  ;;  %1583 = vmatprep.subr.mxu1 %v1438_v30  ;;  %v1429_v49 = vsel %vm1301_vm12, %v3948_v33, %v3960_v39  ;;  %v1424_v38 = vsel %vm1296_vm13, %v3951_v50, %v3961_v22  ;;  %v1426_v19 = vsel %vm1298_vm14, %v3952_v20, %v3962_v40  ;;  %v1653_v36 = vunpack.c.l.s4 %v1976_v55 }
 0x27f   : > { %1513 = vmatpush1.msra.mxu0 %v1435_v6  ;;  %1584 = vmatpush1.msra.mxu1 %v1437_v43  ;;  %v1423_v63 = vsel %vm1295_vm15, %v3955_v23, %v3963_v46  ;;  %v1425_v48 = vsel %vm1297_vm0, %v3956_v42, %v3964_v0  ;;  %v1655_v31 = vlaneseq }
 0x280   : > { %1514 = vmatprep.subr.mxu0 %v1432_v25  ;;  %1585 = vmatprep.subr.mxu1 %v1434_v51  ;;  %v1654_v34 = vunpack.c.0.s8 %v1653_v36 }
 0x281   : > { %1515 = vmatpush1.msra.mxu0 %v1431_v3  ;;  %1586 = vmatpush1.msra.mxu1 %v1433_v4  ;;  %v1656_v18 = vshrl.u32 %v1655_v31, 7  ;;  %vm1677_vm1 = vcmp.lt.s32.totalorder %v1655_v31, 512 }
 0x282   : > { %1516 = vmatprep.subr.mxu0 %v1428_v52  ;;  %1587 = vmatprep.subr.mxu1 %v1430_v28 }
 0x283   : > { %1517 = vmatpush1.msra.mxu0 %v1427_v15  ;;  %1588 = vmatpush1.msra.mxu1 %v1429_v49  ;;  %v1657_v35 = vsub.s32 %v1654_v34, %v1656_v18 }
 0x284   : > { %1518 = vmatprep.subr.mxu0 %v1424_v38  ;;  %1589 = vmatprep.subr.mxu1 %v1426_v19 }
 0x285   : > { %1519 = vmatpush1.msra.mxu0 %v1423_v63  ;;  %1590 = vmatpush1.msra.mxu1 %v1425_v48 }
 0x286   : > { %1553 = vmatmul.mubr.f32.vlgmr.msra.gmra.mxu0 %v1487_v24  ;;  %1624 = vmatmul.mubr.f32.vlgmr.msra.gmra.mxu1 %v1487_v24 }
 0x346   : > { %v1554_v59 = vpop.f32.mrf.mxu0  ;;  %v1625_v62 = vpop.f32.mrf.mxu1 }
 0x347   : > { %v1634_v44 = vrot.slane %v1554_v59, 7  ;;  %v1636_v1 = vrot.slane %v1625_v62, 7 }
 0x348   : > { %v1556_v26 = vpop.f32.mrf.mxu0  ;;  %v1627_v11 = vpop.f32.mrf.mxu1 }
 0x349   : > { %v1635_v9 = vrot.slane %v1556_v26, 7  ;;  %v1637_v21 = vrot.slane %v1627_v11, 7  ;;  %v1642_v54 = vsub.f32 %v1554_v59, %v1634_v44  ;;  %v1644_v32 = vsub.f32 %v1625_v62, %v1636_v1 }
 0x34b   : > { %v1643_v47 = vsub.f32 %v1556_v26, %v1635_v9  ;;  %v1645_v7 = vsub.f32 %v1627_v11, %v1637_v21 }
 0x34d   : > { %v1650_v60 = vcombine.low %v1642_v54, %v1643_v47  ;;  %v1651_v2 = vcombine.low %v1644_v32, %v1645_v7 }
 0x34f   : > { %v1658_v10 = vrot.slane %v1650_v60, %v1657_v35  ;;  %v1665_v61 = vrot.slane %v1651_v2, %v1657_v35 }
 0x351   : > { %v1666_v41 = vcombine.high %v1658_v10, %v1665_v61 }
 0x353   : > { %v1673_v57 = vrot.slane %v1666_v41, %v1657_v35 }
 0x355   : > { %1679 = vst.msk [vmem:[%s271_s16] sm:$0xf] %vm1677_vm1, %v1673_v57 }
 0x356   : > { %1918 = shalt.err (!%p1915_p1)
}
 0x357   : > { %s1919_s10 = scalar_lea.hbm %s1693_s26, 64  ;;  %s1923_s12 = scalar_lea.hbm %s3552_s5, 256 }
 0x358   : > { %p1920_p2 = scmp.ne.s32.totalorder %s1693_s26, %s1919_s10  ;;  %p1924_p7 = scmp.lt.s32.totalorder %s1693_s26, %s3552_s5 }
 0x359   : > { %p1925_p8 = scmp.lt.s32.totalorder %s1923_s12, %s1919_s10 }
 0x35a   : > { %p1921_p3 = pnand %p1920_p2, %p3965_p6 }
 0x35b   : > { %p1926_p9 = por %p1925_p8, %p1924_p7 }
 0x35c   : > { %p1922_p4 = pneg %p1921_p3 }
 0x35e   : > { %p1927_p5 = pnand %p1926_p9, %p1922_p4 }
 0x360   : > { %1930 = shalt.err (!%p1927_p5)
}
 0x361   : > { %1826 = dma.vmem_to_hbm [thread:$0]  (%p3965_p6), %s1696_s17, 64, %s1693_s26, %s1681_s7  }
 0x362 PF: > { %p1838_p10 = scmp.ge.s32.totalorder %s1969_s21, 2  ;;  %s1707_s15 = sand.u32 1, %s1957_s18  }
 0x363   : > { %p3966_p11 = scmp.ne.s32.totalorder %s3684_s30, 0  ;;  %s1708_s16 = scalar_lea.sflag [#allocation5], %s1707_s15 }
 0x365   : > { %p1833_p12 = pnand %p1838_p10, %p3966_p11 }
 0x367   : > { %p1834_p13 = pneg %p1833_p12 }
 0x369   : > { %1952 = dma.done.wait (%p1834_p13), %s1708_s16, 64  }
 0x36a   : > { %1954 = vsyncadd (%p1834_p13), %s1708_s16, 4294967232  ;;  %p16_p0 = scmp.ge.s32.totalorder %s2033_s24, 6   ;;  %s3967_s18 = smov %s1961_s19 }
 0x36b   : > { %s3968_s19 = smov %s1965_s20  ;;  %s3969_s20 = smov %s2045_s27 }
 0x36c   : > { %s3970_s21 = smov %s2033_s24  ;;  %18 = sbr.rel (!%p16_p0) target bundleno = 4 (0x4), region = 108 }
 0x371   :  { %1713 = vsyncpa [#allocation4], 1 }
 0x372   :  { %1715 = vsyncpa [#allocation4 + $0x1], 1 }
 0x373   :  { %1716 = vsyncpa [#allocation5], 1 }
 0x374   :  { %1718 = vsyncpa [#allocation5 + $0x1], 1 }

</bundles_post_ra>
